<compile_context>
chip_gen: v7x
topology: tpu7x:2x2x1
jax: 0.10.0
libtpu: 0.0.40
codegen_flags: <defaults>
</compile_context>

<pallas_src>
import functools

import jax
import jax.numpy as jnp
from jax.experimental import pallas as pl
from jax.experimental.pallas import tpu as pltpu

CLS_ID = 1
SEP_ID = 2
LN_EPS = 1e-12


def _layer_norm(x, g, b):
    mu = jnp.mean(x, axis=-1, keepdims=True)
    var = jnp.mean(jnp.square(x - mu), axis=-1, keepdims=True)
    return (x - mu) * jax.lax.rsqrt(var + LN_EPS) * g + b


# ----------------------------------------------------------------------------
# Pallas kernel: ALL L BERT-style (post-LN) encoder layers, fused.
# grid = (B, L); hidden state lives in VMEM scratch across the L axis.
# ----------------------------------------------------------------------------
def fused_encoder_kernel(x_ref, mask_ref, wqkv_ref, bqkv_ref, wo_ref, bo_ref,
                         ln1g_ref, ln1b_ref, w1_ref, b1_ref, w2_ref, b2_ref,
                         ln2g_ref, ln2b_ref, out_ref, x_sc, ctx_sc, *, num_heads):
    layer = pl.program_id(1)
    num_layers = pl.num_programs(1)

    @pl.when(layer == 0)
    def _():
        x_sc[...] = x_ref[0]          # load initial hidden state once per row

    x = x_sc[...]                     # (S, H) f32, resident across layers
    mask = mask_ref[0]                # (1, S); 1.0 = attend, 0.0 = padding
    S, H = x.shape
    dh = H // num_heads
    scale = 1.0 / float(dh) ** 0.5
    neg_bias = (mask - 1.0) * 1e9     # broadcast over query rows

    # bf16 matmul inputs, f32 accumulation (preferred_element_type).
    xb = x.astype(jnp.bfloat16)
    qkv = jnp.dot(xb, wqkv_ref[0], preferred_element_type=jnp.float32) + bqkv_ref[0]
    q = qkv[:, :H]
    k = qkv[:, H:2 * H]
    v = qkv[:, 2 * H:]

    # Per-head attention: dot_general contracts on dh (no kh.T materialized);
    # head contexts are written straight into a VMEM scratch (no concatenate).
    for h in range(num_heads):        # static loop over heads
        qh = q[:, h * dh:(h + 1) * dh].astype(jnp.bfloat16)
        kh = k[:, h * dh:(h + 1) * dh].astype(jnp.bfloat16)
        vh = v[:, h * dh:(h + 1) * dh].astype(jnp.bfloat16)
        s = jax.lax.dot_general(qh, kh, (((1,), (1,)), ((), ())),
                                preferred_element_type=jnp.float32)
        s = s * scale + neg_bias
        s = s - jnp.max(s, axis=-1, keepdims=True)
        e = jnp.exp(s)
        p = e * pl.reciprocal(jnp.sum(e, axis=-1, keepdims=True), approx=True)
        ctx_sc[:, h * dh:(h + 1) * dh] = jnp.dot(
            p.astype(jnp.bfloat16), vh, preferred_element_type=jnp.float32)

    attn = jnp.dot(ctx_sc[...].astype(jnp.bfloat16), wo_ref[0],
                   preferred_element_type=jnp.float32) + bo_ref[0]
    x1 = _layer_norm(x + attn, ln1g_ref[0], ln1b_ref[0])

    # TODO(synk): for large S*F, chunk the FFN over F to bound the (S, F)
    # intermediate; at these sizes the full hdn tensor is tiny.
    hdn = jnp.dot(x1.astype(jnp.bfloat16), w1_ref[0],
                  preferred_element_type=jnp.float32) + b1_ref[0]
    hdn = jax.nn.gelu(hdn, approximate=True)
    ffn = jnp.dot(hdn.astype(jnp.bfloat16), w2_ref[0],
                  preferred_element_type=jnp.float32) + b2_ref[0]
    x2 = _layer_norm(x1 + ffn, ln2g_ref[0], ln2b_ref[0])
    x_sc[...] = x2                    # carry hidden state to next layer

    @pl.when(layer == num_layers - 1)
    def _():
        out_ref[0] = x2               # single HBM writeback per batch row


def fused_encoder(x, mask3, stacked, num_heads, num_layers):
    B, S, H = x.shape
    F = stacked["w1"].shape[-1]

    def wspec(d0, d1):
        # stacked weight (L, d0, d1): index by layer -> prefetches layer l+1
        # under layer l compute via default double-buffering.
        return pl.BlockSpec((1, d0, d1), lambda b, l: (l, 0, 0))

    in_specs = [
        pl.BlockSpec((1, S, H), lambda b, l: (b, 0, 0)),   # x (fetched once per b)
        pl.BlockSpec((1, 1, S), lambda b, l: (b, 0, 0)),   # attention mask
        wspec(H, 3 * H), wspec(1, 3 * H),                  # wqkv, bqkv
        wspec(H, H), wspec(1, H),                          # wo, bo
        wspec(1, H), wspec(1, H),                          # ln1 gamma/beta
        wspec(H, F), wspec(1, F),                          # w1, b1
        wspec(F, H), wspec(1, H),                          # w2, b2
        wspec(1, H), wspec(1, H),                          # ln2 gamma/beta
    ]

    # VMEM budget: 2x-buffered bf16 weights + f32 biases + activations.
    w_bytes = 2 * 2 * (H * 3 * H + H * H + 2 * H * F)          # bf16, double buffered
    b_bytes = 2 * 4 * (3 * H + 6 * H + F)                      # f32 biases / LN params
    act_bytes = 4 * (4 * S * H + 3 * S * H + S * F)            # x/out/scratch + qkv + hdn
    vmem_limit = min(64 * 1024 * 1024,
                     max(16 * 1024 * 1024,
                         int(1.5 * (w_bytes + b_bytes + act_bytes))))

    return pl.pallas_call(
        functools.partial(fused_encoder_kernel, num_heads=num_heads),
        out_shape=jax.ShapeDtypeStruct((B, S, H), jnp.float32),
        grid_spec=pltpu.PrefetchScalarGridSpec(
            num_scalar_prefetch=0,
            grid=(B, num_layers),
            in_specs=in_specs,
            out_specs=pl.BlockSpec((1, S, H), lambda b, l: (b, 0, 0)),
            scratch_shapes=[pltpu.VMEM((S, H), jnp.float32),   # resident hidden state
                            pltpu.VMEM((S, H), jnp.float32)],  # per-head ctx slab
        ),
        compiler_params=pltpu.CompilerParams(
            dimension_semantics=("parallel", "arbitrary"),
            vmem_limit_bytes=vmem_limit),
    )(x, mask3,
      stacked["wqkv"], stacked["bqkv"], stacked["wo"], stacked["bo"],
      stacked["ln1g"], stacked["ln1b"], stacked["w1"], stacked["b1"],
      stacked["w2"], stacked["b2"], stacked["ln2g"], stacked["ln2b"])


# ----------------------------------------------------------------------------
# Pallas kernel: cross-encoder head.
# Gridded over B; CLS / first-SEP positions arrive via scalar prefetch and the
# two rows are read with dynamic slices, then score = <query, passage>.
# ----------------------------------------------------------------------------
def score_kernel(cls_ref, sep_ref, hidden_ref, out_ref):
    b = pl.program_id(0)
    row_view = hidden_ref.at[0]                     # (S, H) view of this batch row
    q = row_view[pl.ds(cls_ref[b], 1), :]           # (1, H) CLS embedding
    p = row_view[pl.ds(sep_ref[b], 1), :]           # (1, H) first-SEP embedding
    out_ref[0] = jnp.sum(q * p, axis=-1, keepdims=True)   # (1, 1)


def cross_encoder_scores(final_hidden, cls_pos, sep_pos):
    B, S, H = final_hidden.shape
    out = pl.pallas_call(
        score_kernel,
        out_shape=jax.ShapeDtypeStruct((B, 1, 1), jnp.float32),
        grid_spec=pltpu.PrefetchScalarGridSpec(
            num_scalar_prefetch=2,
            grid=(B,),
            in_specs=[pl.BlockSpec((1, S, H), lambda b, cls, sep: (b, 0, 0))],
            out_specs=pl.BlockSpec((1, 1, 1), lambda b, cls, sep: (b, 0, 0)),
        ),
        compiler_params=pltpu.CompilerParams(dimension_semantics=("parallel",)),
    )(cls_pos, sep_pos, final_hidden)
    return out[:, 0, :]                             # (B, 1)


# ----------------------------------------------------------------------------
# Full forward (embedding gather + CLS/SEP index extraction are JAX glue).
# ----------------------------------------------------------------------------
def cross_encoder_forward(params, stacked, input_ids, token_type_ids,
                          attention_mask, num_heads):
    B, S = input_ids.shape
    # TODO(synk): embedding-table gather + embedding LayerNorm left as XLA glue.
    emb = (params["tok_emb"][input_ids]
           + params["pos_emb"][jnp.arange(S)][None, :, :]
           + params["type_emb"][token_type_ids])
    x = _layer_norm(emb, params["emb_ln_g"], params["emb_ln_b"])
    mask3 = attention_mask.astype(jnp.float32)[:, None, :]        # (B, 1, S)

    x = fused_encoder(x, mask3, stacked, num_heads, len(params["layers"]))

    # torch `(input_ids == id).nonzero()` -> first occurrence per row (glue).
    cls_pos = jnp.argmax(input_ids == CLS_ID, axis=1).astype(jnp.int32)   # (B,)
    sep_pos = jnp.argmax(input_ids == SEP_ID, axis=1).astype(jnp.int32)   # (B,)
    scores = cross_encoder_scores(x, cls_pos, sep_pos)
    return scores, x


# ----------------------------------------------------------------------------
# Pure-JAX f32 reference for validation.
# ----------------------------------------------------------------------------
def reference_forward(params, input_ids, token_type_ids, attention_mask, num_heads):
    B, S = input_ids.shape
    emb = (params["tok_emb"][input_ids]
           + params["pos_emb"][jnp.arange(S)][None, :, :]
           + params["type_emb"][token_type_ids])
    x = _layer_norm(emb, params["emb_ln_g"], params["emb_ln_b"])
    H = x.shape[-1]
    dh = H // num_heads
    neg_bias = (attention_mask.astype(jnp.float32) - 1.0)[:, None, None, :] * 1e9
    for lp in params["layers"]:
        qkv = x @ lp["wqkv"] + lp["bqkv"]
        q, k, v = qkv[..., :H], qkv[..., H:2 * H], qkv[..., 2 * H:]

        def split(t):
            return t.reshape(B, S, num_heads, dh).transpose(0, 2, 1, 3)

        qh, kh, vh = split(q), split(k), split(v)
        s = jnp.einsum("bhqd,bhkd->bhqk", qh, kh) / jnp.sqrt(dh) + neg_bias
        p = jax.nn.softmax(s, axis=-1)
        ctx = jnp.einsum("bhqk,bhkd->bhqd", p, vh).transpose(0, 2, 1, 3).reshape(B, S, H)
        x1 = _layer_norm(x + ctx @ lp["wo"] + lp["bo"], lp["ln1g"], lp["ln1b"])
        ffn = jax.nn.gelu(x1 @ lp["w1"] + lp["b1"], approximate=True) @ lp["w2"] + lp["b2"]
        x = _layer_norm(x1 + ffn, lp["ln2g"], lp["ln2b"])
    cls_pos = jnp.argmax(input_ids == CLS_ID, axis=1)
    sep_pos = jnp.argmax(input_ids == SEP_ID, axis=1)
    q_emb = x[jnp.arange(B), cls_pos]
    p_emb = x[jnp.arange(B), sep_pos]
    return jnp.sum(q_emb * p_emb, axis=-1, keepdims=True)


def init_params(key, vocab, max_seq, hidden, ffn, num_layers):
    def rnd(k, shape):
        return 0.02 * jax.random.normal(k, shape, jnp.float32)

    keys = jax.random.split(key, 3 + 4 * num_layers)
    params = {
        "tok_emb": rnd(keys[0], (vocab, hidden)),
        "pos_emb": rnd(keys[1], (max_seq, hidden)),
        "type_emb": rnd(keys[2], (2, hidden)),
        "emb_ln_g": jnp.ones((1, hidden), jnp.float32),
        "emb_ln_b": jnp.zeros((1, hidden), jnp.float32),
        "layers": [],
    }
    for i in range(num_layers):
        k0, k1, k2, k3 = keys[3 + 4 * i:3 + 4 * (i + 1)]
        params["layers"].append({
            "wqkv": rnd(k0, (hidden, 3 * hidden)),
            "bqkv": jnp.zeros((1, 3 * hidden), jnp.float32),
            "wo": rnd(k1, (hidden, hidden)),
            "bo": jnp.zeros((1, hidden), jnp.float32),
            "ln1g": jnp.ones((1, hidden), jnp.float32),
            "ln1b": jnp.zeros((1, hidden), jnp.float32),
            "w1": rnd(k2, (hidden, ffn)),
            "b1": jnp.zeros((1, ffn), jnp.float32),
            "w2": rnd(k3, (ffn, hidden)),
            "b2": jnp.zeros((1, hidden), jnp.float32),
            "ln2g": jnp.ones((1, hidden), jnp.float32),
            "ln2b": jnp.zeros((1, hidden), jnp.float32),
        })
    return params


def stack_layer_params(params):
    """Stack per-layer weights along a leading L axis; matmul weights in bf16."""
    def stk(name, dtype):
        return jnp.stack([lp[name] for lp in params["layers"]]).astype(dtype)

    bf16, f32 = jnp.bfloat16, jnp.float32
    return {
        "wqkv": stk("wqkv", bf16), "bqkv": stk("bqkv", f32),
        "wo": stk("wo", bf16), "bo": stk("bo", f32),
        "ln1g": stk("ln1g", f32), "ln1b": stk("ln1b", f32),
        "w1": stk("w1", bf16), "b1": stk("b1", f32),
        "w2": stk("w2", bf16), "b2": stk("b2", f32),
        "ln2g": stk("ln2g", f32), "ln2b": stk("ln2b", f32),
    }


if __name__ == "__main__":
    B, S, H, NH, F, L, V = 2, 16, 64, 2, 128, 2, 32

    key = jax.random.PRNGKey(0)
    pkey, tkey = jax.random.split(key)
    params = init_params(pkey, V, S, H, F, L)
    stacked = stack_layer_params(params)

    # Build [CLS] q ... [SEP] p ... [SEP]-style inputs (no padding).
    input_ids = jax.random.randint(tkey, (B, S), 3, V, dtype=jnp.int32)
    first_sep = jnp.array([7, 9], dtype=jnp.int32)
    input_ids = input_ids.at[:, 0].set(CLS_ID)
    input_ids = input_ids.at[jnp.arange(B), first_sep].set(SEP_ID)
    input_ids = input_ids.at[:, S - 1].set(SEP_ID)
    token_type_ids = (jnp.arange(S)[None, :] > first_sep[:, None]).astype(jnp.int32)
    attention_mask = jnp.ones((B, S), jnp.int32)

    # Module's sanity check: 2 * (#CLS) == (#SEP).
    assert 2 * int(jnp.sum(input_ids == CLS_ID)) == int(jnp.sum(input_ids == SEP_ID))

    scores, final_hidden = cross_encoder_forward(
        params, stacked, input_ids, token_type_ids, attention_mask, NH)
    scores = jax.block_until_ready(scores)
    assert scores.shape == (B, 1)

    ref = reference_forward(params, input_ids, token_type_ids, attention_mask, NH)
    # Kernel matmuls are bf16-in / f32-accumulate; reference is pure f32.
    assert jnp.allclose(scores, ref, rtol=5e-2, atol=1e-1), (scores, ref)

    print("KERNEL_OK")
</pallas_src>

<mosaic_0001>
module attributes {stable_mosaic.version = 11 : i64} {
  func.func @fused_encoder_kernel(%arg0: i32, %arg1: i32, %arg2: memref<1x16x64xf32, #tpu.memory_space<vmem>>, %arg3: memref<1x1x16xf32, #tpu.memory_space<vmem>>, %arg4: memref<1x64x192xbf16, #tpu.memory_space<vmem>>, %arg5: memref<1x1x192xf32, #tpu.memory_space<vmem>>, %arg6: memref<1x64x64xbf16, #tpu.memory_space<vmem>>, %arg7: memref<1x1x64xf32, #tpu.memory_space<vmem>>, %arg8: memref<1x1x64xf32, #tpu.memory_space<vmem>>, %arg9: memref<1x1x64xf32, #tpu.memory_space<vmem>>, %arg10: memref<1x64x128xbf16, #tpu.memory_space<vmem>>, %arg11: memref<1x1x128xf32, #tpu.memory_space<vmem>>, %arg12: memref<1x128x64xbf16, #tpu.memory_space<vmem>>, %arg13: memref<1x1x64xf32, #tpu.memory_space<vmem>>, %arg14: memref<1x1x64xf32, #tpu.memory_space<vmem>>, %arg15: memref<1x1x64xf32, #tpu.memory_space<vmem>>, %arg16: memref<1x16x64xf32, #tpu.memory_space<vmem>>, %arg17: memref<16x64xf32, #tpu.memory_space<vmem>>, %arg18: memref<16x64xf32, #tpu.memory_space<vmem>>) attributes {dimension_semantics = [#tpu.dimension_semantics<parallel>, #tpu.dimension_semantics<arbitrary>], iteration_bounds = array<i64: 2, 2>, scalar_prefetch = 0 : i64, scratch_operands = 2 : i64, tpu.core_type = #tpu.core_type<tc>, window_params = [{transform_indices = @transform_0, window_bounds = array<i64: 1, 16, 64>}, {transform_indices = @transform_1, window_bounds = array<i64: 1, 1, 16>}, {transform_indices = @transform_2, window_bounds = array<i64: 1, 64, 192>}, {transform_indices = @transform_3, window_bounds = array<i64: 1, 1, 192>}, {transform_indices = @transform_4, window_bounds = array<i64: 1, 64, 64>}, {transform_indices = @transform_5, window_bounds = array<i64: 1, 1, 64>}, {transform_indices = @transform_6, window_bounds = array<i64: 1, 1, 64>}, {transform_indices = @transform_7, window_bounds = array<i64: 1, 1, 64>}, {transform_indices = @transform_8, window_bounds = array<i64: 1, 64, 128>}, {transform_indices = @transform_9, window_bounds = array<i64: 1, 1, 128>}, {transform_indices = @transform_10, window_bounds = array<i64: 1, 128, 64>}, {transform_indices = @transform_11, window_bounds = array<i64: 1, 1, 64>}, {transform_indices = @transform_12, window_bounds = array<i64: 1, 1, 64>}, {transform_indices = @transform_13, window_bounds = array<i64: 1, 1, 64>}, {transform_indices = @transform_14, window_bounds = array<i64: 1, 16, 64>}]} {
    %c0_i32 = arith.constant 0 : i32
    %0 = arith.cmpi eq, %arg1, %c0_i32 : i32
    %1 = arith.extui %0 : i1 to i32
    %c0_i32_0 = arith.constant 0 : i32
    %2 = arith.cmpi ne, %1, %c0_i32_0 : i32
    scf.if %2 {
      %c0_78 = arith.constant 0 : index
      %c0_79 = arith.constant 0 : index
      %c0_80 = arith.constant 0 : index
      %165 = vector.load %arg2[%c0_78, %c0_79, %c0_80] : memref<1x16x64xf32, #tpu.memory_space<vmem>>, vector<1x16x64xf32>
      %166 = vector.shape_cast %165 : vector<1x16x64xf32> to vector<16x64xf32>
      %c0_81 = arith.constant 0 : index
      %c0_82 = arith.constant 0 : index
      %167 = vector.load %arg17[%c0_81, %c0_82] : memref<16x64xf32, #tpu.memory_space<vmem>>, vector<16x64xf32>
      tpu.vector_store %arg17[%c0_81, %c0_82], %166 {strides = array<i32>} : memref<16x64xf32, #tpu.memory_space<vmem>>, vector<16x64xf32>,
    } else {
    }
    %c0 = arith.constant 0 : index
    %c0_1 = arith.constant 0 : index
    %3 = vector.load %arg17[%c0, %c0_1] : memref<16x64xf32, #tpu.memory_space<vmem>>, vector<16x64xf32>
    %c0_2 = arith.constant 0 : index
    %c0_3 = arith.constant 0 : index
    %c0_4 = arith.constant 0 : index
    %4 = vector.load %arg3[%c0_2, %c0_3, %c0_4] : memref<1x1x16xf32, #tpu.memory_space<vmem>>, vector<1x1x16xf32>
    %5 = vector.shape_cast %4 : vector<1x1x16xf32> to vector<1x16xf32>
    %cst = arith.constant 1.000000e+00 : f32
    %6 = vector.broadcast %cst : f32 to vector<1x16xf32>
    %7 = arith.subf %5, %6 : vector<1x16xf32>
    %cst_5 = arith.constant 1.000000e+09 : f32
    %8 = vector.broadcast %cst_5 : f32 to vector<1x16xf32>
    %9 = arith.mulf %7, %8 : vector<1x16xf32>
    %10 = arith.truncf %3 : vector<16x64xf32> to vector<16x64xbf16>
    %c0_6 = arith.constant 0 : index
    %c0_7 = arith.constant 0 : index
    %c0_8 = arith.constant 0 : index
    %11 = vector.load %arg4[%c0_6, %c0_7, %c0_8] : memref<1x64x192xbf16, #tpu.memory_space<vmem>>, vector<1x64x192xbf16>
    %12 = vector.shape_cast %11 : vector<1x64x192xbf16> to vector<64x192xbf16>
    %cst_9 = arith.constant dense<0.000000e+00> : vector<16x192xf32>
    %13 = tpu.matmul %10, %12, %cst_9 {dimension_numbers = #tpu.dot_dimension_numbers<[1], [0], [0], [1], [0, 0, 1, 1], [], []>} : vector<16x64xbf16>, vector<64x192xbf16>, vector<16x192xf32> -> vector<16x192xf32>
    %c0_10 = arith.constant 0 : index
    %c0_11 = arith.constant 0 : index
    %c0_12 = arith.constant 0 : index
    %14 = vector.load %arg5[%c0_10, %c0_11, %c0_12] : memref<1x1x192xf32, #tpu.memory_space<vmem>>, vector<1x1x192xf32>
    %15 = vector.shape_cast %14 : vector<1x1x192xf32> to vector<1x192xf32>
    %16 = vector.broadcast %15 : vector<1x192xf32> to vector<16x192xf32>
    %17 = arith.addf %13, %16 : vector<16x192xf32>
    %18 = vector.extract_strided_slice %17 {offsets = [0, 0], sizes = [16, 64], strides = [1, 1]} : vector<16x192xf32> to vector<16x64xf32>
    %19 = vector.extract_strided_slice %17 {offsets = [0, 64], sizes = [16, 64], strides = [1, 1]} : vector<16x192xf32> to vector<16x64xf32>
    %20 = vector.extract_strided_slice %17 {offsets = [0, 128], sizes = [16, 64], strides = [1, 1]} : vector<16x192xf32> to vector<16x64xf32>
    %21 = vector.extract_strided_slice %18 {offsets = [0, 0], sizes = [16, 32], strides = [1, 1]} : vector<16x64xf32> to vector<16x32xf32>
    %22 = arith.truncf %21 : vector<16x32xf32> to vector<16x32xbf16>
    %23 = vector.extract_strided_slice %19 {offsets = [0, 0], sizes = [16, 32], strides = [1, 1]} : vector<16x64xf32> to vector<16x32xf32>
    %24 = arith.truncf %23 : vector<16x32xf32> to vector<16x32xbf16>
    %25 = vector.extract_strided_slice %20 {offsets = [0, 0], sizes = [16, 32], strides = [1, 1]} : vector<16x64xf32> to vector<16x32xf32>
    %26 = arith.truncf %25 : vector<16x32xf32> to vector<16x32xbf16>
    %cst_13 = arith.constant dense<0.000000e+00> : vector<16x16xf32>
    %27 = tpu.matmul %22, %24, %cst_13 {dimension_numbers = #tpu.dot_dimension_numbers<[1], [1], [0], [0], [0, 0, 1, 0], [], []>} : vector<16x32xbf16>, vector<16x32xbf16>, vector<16x16xf32> -> vector<16x16xf32>
    %cst_14 = arith.constant 0.176776692 : f32
    %28 = vector.broadcast %cst_14 : f32 to vector<16x16xf32>
    %29 = arith.mulf %27, %28 : vector<16x16xf32>
    %30 = vector.broadcast %9 : vector<1x16xf32> to vector<16x16xf32>
    %31 = arith.addf %29, %30 : vector<16x16xf32>
    %cst_15 = arith.constant dense<0xFF800000> : vector<16xf32>
    %32 = vector.multi_reduction <maximumf>, %31, %cst_15 [1] : vector<16x16xf32> to vector<16xf32>
    %33 = vector.shape_cast %32 : vector<16xf32> to vector<16x1xf32>
    %34 = vector.broadcast %33 : vector<16x1xf32> to vector<16x16xf32>
    %35 = arith.subf %31, %34 : vector<16x16xf32>
    %36 = math.exp %35 : vector<16x16xf32>
    %cst_16 = arith.constant dense<0.000000e+00> : vector<16xf32>
    %37 = vector.multi_reduction <add>, %36, %cst_16 [1] : vector<16x16xf32> to vector<16xf32>
    %38 = vector.shape_cast %37 : vector<16xf32> to vector<16x1xf32>
    %39 = tpu.reciprocal %38 {approx = true} : vector<16x1xf32> -> vector<16x1xf32>
    %40 = vector.broadcast %39 : vector<16x1xf32> to vector<16x16xf32>
    %41 = arith.mulf %36, %40 : vector<16x16xf32>
    %42 = arith.truncf %41 : vector<16x16xf32> to vector<16x16xbf16>
    %cst_17 = arith.constant dense<0.000000e+00> : vector<16x32xf32>
    %43 = tpu.matmul %42, %26, %cst_17 {dimension_numbers = #tpu.dot_dimension_numbers<[1], [0], [0], [1], [0, 0, 1, 1], [], []>} : vector<16x16xbf16>, vector<16x32xbf16>, vector<16x32xf32> -> vector<16x32xf32>
    %c0_18 = arith.constant 0 : index
    %c0_19 = arith.constant 0 : index
    %44 = vector.load %arg18[%c0_18, %c0_19] : memref<16x64xf32, #tpu.memory_space<vmem>>, vector<16x32xf32>
    tpu.vector_store %arg18[%c0_18, %c0_19], %43 {strides = array<i32>} : memref<16x64xf32, #tpu.memory_space<vmem>>, vector<16x32xf32>,
    %45 = vector.extract_strided_slice %18 {offsets = [0, 32], sizes = [16, 32], strides = [1, 1]} : vector<16x64xf32> to vector<16x32xf32>
    %46 = arith.truncf %45 : vector<16x32xf32> to vector<16x32xbf16>
    %47 = vector.extract_strided_slice %19 {offsets = [0, 32], sizes = [16, 32], strides = [1, 1]} : vector<16x64xf32> to vector<16x32xf32>
    %48 = arith.truncf %47 : vector<16x32xf32> to vector<16x32xbf16>
    %49 = vector.extract_strided_slice %20 {offsets = [0, 32], sizes = [16, 32], strides = [1, 1]} : vector<16x64xf32> to vector<16x32xf32>
    %50 = arith.truncf %49 : vector<16x32xf32> to vector<16x32xbf16>
    %cst_20 = arith.constant dense<0.000000e+00> : vector<16x16xf32>
    %51 = tpu.matmul %46, %48, %cst_20 {dimension_numbers = #tpu.dot_dimension_numbers<[1], [1], [0], [0], [0, 0, 1, 0], [], []>} : vector<16x32xbf16>, vector<16x32xbf16>, vector<16x16xf32> -> vector<16x16xf32>
    %cst_21 = arith.constant 0.176776692 : f32
    %52 = vector.broadcast %cst_21 : f32 to vector<16x16xf32>
    %53 = arith.mulf %51, %52 : vector<16x16xf32>
    %54 = vector.broadcast %9 : vector<1x16xf32> to vector<16x16xf32>
    %55 = arith.addf %53, %54 : vector<16x16xf32>
    %cst_22 = arith.constant dense<0xFF800000> : vector<16xf32>
    %56 = vector.multi_reduction <maximumf>, %55, %cst_22 [1] : vector<16x16xf32> to vector<16xf32>
    %57 = vector.shape_cast %56 : vector<16xf32> to vector<16x1xf32>
    %58 = vector.broadcast %57 : vector<16x1xf32> to vector<16x16xf32>
    %59 = arith.subf %55, %58 : vector<16x16xf32>
    %60 = math.exp %59 : vector<16x16xf32>
    %cst_23 = arith.constant dense<0.000000e+00> : vector<16xf32>
    %61 = vector.multi_reduction <add>, %60, %cst_23 [1] : vector<16x16xf32> to vector<16xf32>
    %62 = vector.shape_cast %61 : vector<16xf32> to vector<16x1xf32>
    %63 = tpu.reciprocal %62 {approx = true} : vector<16x1xf32> -> vector<16x1xf32>
    %64 = vector.broadcast %63 : vector<16x1xf32> to vector<16x16xf32>
    %65 = arith.mulf %60, %64 : vector<16x16xf32>
    %66 = arith.truncf %65 : vector<16x16xf32> to vector<16x16xbf16>
    %cst_24 = arith.constant dense<0.000000e+00> : vector<16x32xf32>
    %67 = tpu.matmul %66, %50, %cst_24 {dimension_numbers = #tpu.dot_dimension_numbers<[1], [0], [0], [1], [0, 0, 1, 1], [], []>} : vector<16x16xbf16>, vector<16x32xbf16>, vector<16x32xf32> -> vector<16x32xf32>
    %c0_25 = arith.constant 0 : index
    %c32 = arith.constant 32 : index
    %68 = vector.load %arg18[%c0_25, %c32] : memref<16x64xf32, #tpu.memory_space<vmem>>, vector<16x32xf32>
    tpu.vector_store %arg18[%c0_25, %c32], %67 {strides = array<i32>} : memref<16x64xf32, #tpu.memory_space<vmem>>, vector<16x32xf32>,
    %c0_26 = arith.constant 0 : index
    %c0_27 = arith.constant 0 : index
    %69 = vector.load %arg18[%c0_26, %c0_27] : memref<16x64xf32, #tpu.memory_space<vmem>>, vector<16x64xf32>
    %70 = arith.truncf %69 : vector<16x64xf32> to vector<16x64xbf16>
    %c0_28 = arith.constant 0 : index
    %c0_29 = arith.constant 0 : index
    %c0_30 = arith.constant 0 : index
    %71 = vector.load %arg6[%c0_28, %c0_29, %c0_30] : memref<1x64x64xbf16, #tpu.memory_space<vmem>>, vector<1x64x64xbf16>
    %72 = vector.shape_cast %71 : vector<1x64x64xbf16> to vector<64x64xbf16>
    %cst_31 = arith.constant dense<0.000000e+00> : vector<16x64xf32>
    %73 = tpu.matmul %70, %72, %cst_31 {dimension_numbers = #tpu.dot_dimension_numbers<[1], [0], [0], [1], [0, 0, 1, 1], [], []>} : vector<16x64xbf16>, vector<64x64xbf16>, vector<16x64xf32> -> vector<16x64xf32>
    %c0_32 = arith.constant 0 : index
    %c0_33 = arith.constant 0 : index
    %c0_34 = arith.constant 0 : index
    %74 = vector.load %arg7[%c0_32, %c0_33, %c0_34] : memref<1x1x64xf32, #tpu.memory_space<vmem>>, vector<1x1x64xf32>
    %75 = vector.shape_cast %74 : vector<1x1x64xf32> to vector<1x64xf32>
    %76 = vector.broadcast %75 : vector<1x64xf32> to vector<16x64xf32>
    %77 = arith.addf %73, %76 : vector<16x64xf32>
    %78 = arith.addf %3, %77 : vector<16x64xf32>
    %c0_35 = arith.constant 0 : index
    %c0_36 = arith.constant 0 : index
    %c0_37 = arith.constant 0 : index
    %79 = vector.load %arg8[%c0_35, %c0_36, %c0_37] : memref<1x1x64xf32, #tpu.memory_space<vmem>>, vector<1x1x64xf32>
    %80 = vector.shape_cast %79 : vector<1x1x64xf32> to vector<1x64xf32>
    %c0_38 = arith.constant 0 : index
    %c0_39 = arith.constant 0 : index
    %c0_40 = arith.constant 0 : index
    %81 = vector.load %arg9[%c0_38, %c0_39, %c0_40] : memref<1x1x64xf32, #tpu.memory_space<vmem>>, vector<1x1x64xf32>
    %82 = vector.shape_cast %81 : vector<1x1x64xf32> to vector<1x64xf32>
    %cst_41 = arith.constant dense<0.000000e+00> : vector<16xf32>
    %83 = vector.multi_reduction <add>, %78, %cst_41 [1] : vector<16x64xf32> to vector<16xf32>
    %84 = vector.shape_cast %83 : vector<16xf32> to vector<16x1xf32>
    %cst_42 = arith.constant 6.400000e+01 : f32
    %85 = vector.broadcast %cst_42 : f32 to vector<16x1xf32>
    %86 = arith.divf %84, %85 : vector<16x1xf32>
    %87 = vector.broadcast %86 : vector<16x1xf32> to vector<16x64xf32>
    %88 = arith.subf %78, %87 : vector<16x64xf32>
    %89 = arith.mulf %88, %88 : vector<16x64xf32>
    %cst_43 = arith.constant dense<0.000000e+00> : vector<16xf32>
    %90 = vector.multi_reduction <add>, %89, %cst_43 [1] : vector<16x64xf32> to vector<16xf32>
    %91 = vector.shape_cast %90 : vector<16xf32> to vector<16x1xf32>
    %cst_44 = arith.constant 6.400000e+01 : f32
    %92 = vector.broadcast %cst_44 : f32 to vector<16x1xf32>
    %93 = arith.divf %91, %92 : vector<16x1xf32>
    %94 = vector.broadcast %86 : vector<16x1xf32> to vector<16x64xf32>
    %95 = arith.subf %78, %94 : vector<16x64xf32>
    %cst_45 = arith.constant 9.99999996E-13 : f32
    %96 = vector.broadcast %cst_45 : f32 to vector<16x1xf32>
    %97 = arith.addf %93, %96 : vector<16x1xf32>
    %98 = math.rsqrt %97 : vector<16x1xf32>
    %99 = vector.broadcast %98 : vector<16x1xf32> to vector<16x64xf32>
    %100 = arith.mulf %95, %99 : vector<16x64xf32>
    %101 = vector.broadcast %80 : vector<1x64xf32> to vector<16x64xf32>
    %102 = arith.mulf %100, %101 : vector<16x64xf32>
    %103 = vector.broadcast %82 : vector<1x64xf32> to vector<16x64xf32>
    %104 = arith.addf %102, %103 : vector<16x64xf32>
    %105 = arith.truncf %104 : vector<16x64xf32> to vector<16x64xbf16>
    %c0_46 = arith.constant 0 : index
    %c0_47 = arith.constant 0 : index
    %c0_48 = arith.constant 0 : index
    %106 = vector.load %arg10[%c0_46, %c0_47, %c0_48] : memref<1x64x128xbf16, #tpu.memory_space<vmem>>, vector<1x64x128xbf16>
    %107 = vector.shape_cast %106 : vector<1x64x128xbf16> to vector<64x128xbf16>
    %cst_49 = arith.constant dense<0.000000e+00> : vector<16x128xf32>
    %108 = tpu.matmul %105, %107, %cst_49 {dimension_numbers = #tpu.dot_dimension_numbers<[1], [0], [0], [1], [0, 0, 1, 1], [], []>} : vector<16x64xbf16>, vector<64x128xbf16>, vector<16x128xf32> -> vector<16x128xf32>
    %c0_50 = arith.constant 0 : index
    %c0_51 = arith.constant 0 : index
    %c0_52 = arith.constant 0 : index
    %109 = vector.load %arg11[%c0_50, %c0_51, %c0_52] : memref<1x1x128xf32, #tpu.memory_space<vmem>>, vector<1x1x128xf32>
    %110 = vector.shape_cast %109 : vector<1x1x128xf32> to vector<1x128xf32>
    %111 = vector.broadcast %110 : vector<1x128xf32> to vector<16x128xf32>
    %112 = arith.addf %108, %111 : vector<16x128xf32>
    %113 = arith.mulf %112, %112 : vector<16x128xf32>
    %114 = arith.mulf %112, %113 : vector<16x128xf32>
    %cst_53 = arith.constant 4.471500e-02 : f32
    %115 = vector.broadcast %cst_53 : f32 to vector<16x128xf32>
    %116 = arith.mulf %115, %114 : vector<16x128xf32>
    %117 = arith.addf %112, %116 : vector<16x128xf32>
    %cst_54 = arith.constant 0.797884583 : f32
    %118 = vector.broadcast %cst_54 : f32 to vector<16x128xf32>
    %119 = arith.mulf %118, %117 : vector<16x128xf32>
    %120 = math.tanh %119 : vector<16x128xf32>
    %cst_55 = arith.constant 1.000000e+00 : f32
    %121 = vector.broadcast %cst_55 : f32 to vector<16x128xf32>
    %122 = arith.addf %121, %120 : vector<16x128xf32>
    %cst_56 = arith.constant 5.000000e-01 : f32
    %123 = vector.broadcast %cst_56 : f32 to vector<16x128xf32>
    %124 = arith.mulf %123, %122 : vector<16x128xf32>
    %125 = arith.mulf %112, %124 : vector<16x128xf32>
    %126 = arith.truncf %125 : vector<16x128xf32> to vector<16x128xbf16>
    %c0_57 = arith.constant 0 : index
    %c0_58 = arith.constant 0 : index
    %c0_59 = arith.constant 0 : index
    %127 = vector.load %arg12[%c0_57, %c0_58, %c0_59] : memref<1x128x64xbf16, #tpu.memory_space<vmem>>, vector<1x128x64xbf16>
    %128 = vector.shape_cast %127 : vector<1x128x64xbf16> to vector<128x64xbf16>
    %cst_60 = arith.constant dense<0.000000e+00> : vector<16x64xf32>
    %129 = tpu.matmul %126, %128, %cst_60 {dimension_numbers = #tpu.dot_dimension_numbers<[1], [0], [0], [1], [0, 0, 1, 1], [], []>} : vector<16x128xbf16>, vector<128x64xbf16>, vector<16x64xf32> -> vector<16x64xf32>
    %c0_61 = arith.constant 0 : index
    %c0_62 = arith.constant 0 : index
    %c0_63 = arith.constant 0 : index
    %130 = vector.load %arg13[%c0_61, %c0_62, %c0_63] : memref<1x1x64xf32, #tpu.memory_space<vmem>>, vector<1x1x64xf32>
    %131 = vector.shape_cast %130 : vector<1x1x64xf32> to vector<1x64xf32>
    %132 = vector.broadcast %131 : vector<1x64xf32> to vector<16x64xf32>
    %133 = arith.addf %129, %132 : vector<16x64xf32>
    %134 = arith.addf %104, %133 : vector<16x64xf32>
    %c0_64 = arith.constant 0 : index
    %c0_65 = arith.constant 0 : index
    %c0_66 = arith.constant 0 : index
    %135 = vector.load %arg14[%c0_64, %c0_65, %c0_66] : memref<1x1x64xf32, #tpu.memory_space<vmem>>, vector<1x1x64xf32>
    %136 = vector.shape_cast %135 : vector<1x1x64xf32> to vector<1x64xf32>
    %c0_67 = arith.constant 0 : index
    %c0_68 = arith.constant 0 : index
    %c0_69 = arith.constant 0 : index
    %137 = vector.load %arg15[%c0_67, %c0_68, %c0_69] : memref<1x1x64xf32, #tpu.memory_space<vmem>>, vector<1x1x64xf32>
    %138 = vector.shape_cast %137 : vector<1x1x64xf32> to vector<1x64xf32>
    %cst_70 = arith.constant dense<0.000000e+00> : vector<16xf32>
    %139 = vector.multi_reduction <add>, %134, %cst_70 [1] : vector<16x64xf32> to vector<16xf32>
    %140 = vector.shape_cast %139 : vector<16xf32> to vector<16x1xf32>
    %cst_71 = arith.constant 6.400000e+01 : f32
    %141 = vector.broadcast %cst_71 : f32 to vector<16x1xf32>
    %142 = arith.divf %140, %141 : vector<16x1xf32>
    %143 = vector.broadcast %142 : vector<16x1xf32> to vector<16x64xf32>
    %144 = arith.subf %134, %143 : vector<16x64xf32>
    %145 = arith.mulf %144, %144 : vector<16x64xf32>
    %cst_72 = arith.constant dense<0.000000e+00> : vector<16xf32>
    %146 = vector.multi_reduction <add>, %145, %cst_72 [1] : vector<16x64xf32> to vector<16xf32>
    %147 = vector.shape_cast %146 : vector<16xf32> to vector<16x1xf32>
    %cst_73 = arith.constant 6.400000e+01 : f32
    %148 = vector.broadcast %cst_73 : f32 to vector<16x1xf32>
    %149 = arith.divf %147, %148 : vector<16x1xf32>
    %150 = vector.broadcast %142 : vector<16x1xf32> to vector<16x64xf32>
    %151 = arith.subf %134, %150 : vector<16x64xf32>
    %cst_74 = arith.constant 9.99999996E-13 : f32
    %152 = vector.broadcast %cst_74 : f32 to vector<16x1xf32>
    %153 = arith.addf %149, %152 : vector<16x1xf32>
    %154 = math.rsqrt %153 : vector<16x1xf32>
    %155 = vector.broadcast %154 : vector<16x1xf32> to vector<16x64xf32>
    %156 = arith.mulf %151, %155 : vector<16x64xf32>
    %157 = vector.broadcast %136 : vector<1x64xf32> to vector<16x64xf32>
    %158 = arith.mulf %156, %157 : vector<16x64xf32>
    %159 = vector.broadcast %138 : vector<1x64xf32> to vector<16x64xf32>
    %160 = arith.addf %158, %159 : vector<16x64xf32>
    %c0_75 = arith.constant 0 : index
    %c0_76 = arith.constant 0 : index
    %161 = vector.load %arg17[%c0_75, %c0_76] : memref<16x64xf32, #tpu.memory_space<vmem>>, vector<16x64xf32>
    tpu.vector_store %arg17[%c0_75, %c0_76], %160 {strides = array<i32>} : memref<16x64xf32, #tpu.memory_space<vmem>>, vector<16x64xf32>,
    %c1_i32 = arith.constant 1 : i32
    %162 = arith.cmpi eq, %arg1, %c1_i32 : i32
    %163 = arith.extui %162 : i1 to i32
    %c0_i32_77 = arith.constant 0 : i32
    %164 = arith.cmpi ne, %163, %c0_i32_77 : i32
    scf.if %164 {
      %c0_78 = arith.constant 0 : index
      %c0_79 = arith.constant 0 : index
      %c0_80 = arith.constant 0 : index
      %165 = vector.load %arg16[%c0_78, %c0_79, %c0_80] : memref<1x16x64xf32, #tpu.memory_space<vmem>>, vector<1x16x64xf32>
      %166 = vector.shape_cast %165 : vector<1x16x64xf32> to vector<16x64xf32>
      %167 = vector.shape_cast %160 : vector<16x64xf32> to vector<1x16x64xf32>
      tpu.vector_store %arg16[%c0_78, %c0_79, %c0_80], %167 {strides = array<i32>} : memref<1x16x64xf32, #tpu.memory_space<vmem>>, vector<1x16x64xf32>,
    } else {
    }
    return
  }
  func.func @transform_0(%arg0: i32, %arg1: i32) -> (i32, i32, i32) {
    %c0_i32 = arith.constant 0 : i32
    %c0_i32_0 = arith.constant 0 : i32
    %c0_i32_1 = arith.constant 0 : i32
    return %arg0, %c0_i32, %c0_i32_0 : i32, i32, i32
  }
  func.func @transform_1(%arg0: i32, %arg1: i32) -> (i32, i32, i32) {
    %c0_i32 = arith.constant 0 : i32
    %c0_i32_0 = arith.constant 0 : i32
    %c0_i32_1 = arith.constant 0 : i32
    return %arg0, %c0_i32, %c0_i32_0 : i32, i32, i32
  }
  func.func @transform_2(%arg0: i32, %arg1: i32) -> (i32, i32, i32) {
    %c0_i32 = arith.constant 0 : i32
    %c0_i32_0 = arith.constant 0 : i32
    %c0_i32_1 = arith.constant 0 : i32
    return %arg1, %c0_i32, %c0_i32_0 : i32, i32, i32
  }
  func.func @transform_3(%arg0: i32, %arg1: i32) -> (i32, i32, i32) {
    %c0_i32 = arith.constant 0 : i32
    %c0_i32_0 = arith.constant 0 : i32
    %c0_i32_1 = arith.constant 0 : i32
    return %arg1, %c0_i32, %c0_i32_0 : i32, i32, i32
  }
  func.func @transform_4(%arg0: i32, %arg1: i32) -> (i32, i32, i32) {
    %c0_i32 = arith.constant 0 : i32
    %c0_i32_0 = arith.constant 0 : i32
    %c0_i32_1 = arith.constant 0 : i32
    return %arg1, %c0_i32, %c0_i32_0 : i32, i32, i32
  }
  func.func @transform_5(%arg0: i32, %arg1: i32) -> (i32, i32, i32) {
    %c0_i32 = arith.constant 0 : i32
    %c0_i32_0 = arith.constant 0 : i32
    %c0_i32_1 = arith.constant 0 : i32
    return %arg1, %c0_i32, %c0_i32_0 : i32, i32, i32
  }
  func.func @transform_6(%arg0: i32, %arg1: i32) -> (i32, i32, i32) {
    %c0_i32 = arith.constant 0 : i32
    %c0_i32_0 = arith.constant 0 : i32
    %c0_i32_1 = arith.constant 0 : i32
    return %arg1, %c0_i32, %c0_i32_0 : i32, i32, i32
  }
  func.func @transform_7(%arg0: i32, %arg1: i32) -> (i32, i32, i32) {
    %c0_i32 = arith.constant 0 : i32
    %c0_i32_0 = arith.constant 0 : i32
    %c0_i32_1 = arith.constant 0 : i32
    return %arg1, %c0_i32, %c0_i32_0 : i32, i32, i32
  }
  func.func @transform_8(%arg0: i32, %arg1: i32) -> (i32, i32, i32) {
    %c0_i32 = arith.constant 0 : i32
    %c0_i32_0 = arith.constant 0 : i32
    %c0_i32_1 = arith.constant 0 : i32
    return %arg1, %c0_i32, %c0_i32_0 : i32, i32, i32
  }
  func.func @transform_9(%arg0: i32, %arg1: i32) -> (i32, i32, i32) {
    %c0_i32 = arith.constant 0 : i32
    %c0_i32_0 = arith.constant 0 : i32
    %c0_i32_1 = arith.constant 0 : i32
    return %arg1, %c0_i32, %c0_i32_0 : i32, i32, i32
  }
  func.func @transform_10(%arg0: i32, %arg1: i32) -> (i32, i32, i32) {
    %c0_i32 = arith.constant 0 : i32
    %c0_i32_0 = arith.constant 0 : i32
    %c0_i32_1 = arith.constant 0 : i32
    return %arg1, %c0_i32, %c0_i32_0 : i32, i32, i32
  }
  func.func @transform_11(%arg0: i32, %arg1: i32) -> (i32, i32, i32) {
    %c0_i32 = arith.constant 0 : i32
    %c0_i32_0 = arith.constant 0 : i32
    %c0_i32_1 = arith.constant 0 : i32
    return %arg1, %c0_i32, %c0_i32_0 : i32, i32, i32
  }
  func.func @transform_12(%arg0: i32, %arg1: i32) -> (i32, i32, i32) {
    %c0_i32 = arith.constant 0 : i32
    %c0_i32_0 = arith.constant 0 : i32
    %c0_i32_1 = arith.constant 0 : i32
    return %arg1, %c0_i32, %c0_i32_0 : i32, i32, i32
  }
  func.func @transform_13(%arg0: i32, %arg1: i32) -> (i32, i32, i32) {
    %c0_i32 = arith.constant 0 : i32
    %c0_i32_0 = arith.constant 0 : i32
    %c0_i32_1 = arith.constant 0 : i32
    return %arg1, %c0_i32, %c0_i32_0 : i32, i32, i32
  }
  func.func @transform_14(%arg0: i32, %arg1: i32) -> (i32, i32, i32) {
    %c0_i32 = arith.constant 0 : i32
    %c0_i32_0 = arith.constant 0 : i32
    %c0_i32_1 = arith.constant 0 : i32
    return %arg0, %c0_i32, %c0_i32_0 : i32, i32, i32
  }
}

</mosaic_0001>

<bundles_post_ra>
// kernel: tpu_custom_call.1
= control target key start
LH: loop header
LB: loop body
LE: loop exit
PB: predicated region body
PF: predicated region fallthrough
CT: control target
= control target key end

     0   :  { %s2926_s0 = inlined_call_operand.hbm [shape: f32[2,16,64], index: 0, kind: input, shape index: {}]   ;;  %s2927_s1 = inlined_call_operand.vmem [shape: f32[2,1,16], index: 1, kind: input, shape index: {}]   ;;  %s2928_s2 = inlined_call_operand.vmem [shape: bf16[2,64,192], index: 2, kind: input, shape index: {}]   ;;  %s2929_s3 = inlined_call_operand.vmem [shape: f32[2,1,192], index: 3, kind: input, shape index: {}]   ;;  %s2930_s4 = inlined_call_operand.vmem [shape: bf16[2,64,64], index: 4, kind: input, shape index: {}]   ;;  %s2931_s5 = inlined_call_operand.vmem [shape: f32[2,1,64], index: 5, kind: input, shape index: {}]   ;;  %s2932_s6 = inlined_call_operand.vmem [shape: f32[2,1,64], index: 6, kind: input, shape index: {}]   ;;  %s2933_s7 = inlined_call_operand.vmem [shape: f32[2,1,64], index: 7, kind: input, shape index: {}]   ;;  %s2934_s8 = inlined_call_operand.hbm [shape: bf16[2,64,128], index: 8, kind: input, shape index: {}]   ;;  %s2935_s9 = inlined_call_operand.vmem [shape: f32[2,1,128], index: 9, kind: input, shape index: {}]   ;;  %s2936_s10 = inlined_call_operand.vmem [shape: bf16[2,128,64], index: 10, kind: input, shape index: {}]   ;;  %s2937_s11 = inlined_call_operand.vmem [shape: f32[2,1,64], index: 11, kind: input, shape index: {}]   ;;  %s2938_s12 = inlined_call_operand.vmem [shape: f32[2,1,64], index: 12, kind: input, shape index: {}]   ;;  %s2939_s13 = inlined_call_operand.vmem [shape: f32[2,1,64], index: 13, kind: input, shape index: {}]   ;;  %s2940_s14 = inlined_call_operand.hbm [shape: f32[2,16,64], index: 14, kind: output, shape index: {}]  }
   0x1   :  { %2964 = sst [smem:[#allocation29_spill]] %s2926_s0 }
   0x2   :  { %2965 = sst [smem:[#allocation30_spill]] %s2928_s2 }
   0x3   :  { %2966 = sst [smem:[#allocation31_spill]] %s2929_s3 }
   0x4   :  { %2967 = sst [smem:[#allocation32_spill]] %s2930_s4 }
   0x5   :  { %2968 = sst [smem:[#allocation33_spill]] %s2931_s5 }
   0x6   :  { %2969 = sst [smem:[#allocation34_spill]] %s2932_s6 }
   0x7   :  { %2970 = sst [smem:[#allocation35_spill]] %s2933_s7 }
   0x8   :  { %2971 = sst [smem:[#allocation36_spill]] %s2934_s8 }
   0x9   :  { %2972 = sst [smem:[#allocation37_spill]] %s2935_s9 }
   0xa   :  { %2973 = sst [smem:[#allocation38_spill]] %s2936_s10 }
   0xb   :  { %2974 = sst [smem:[#allocation39_spill]] %s2937_s11 }
   0xc   :  { %2975 = sst [smem:[#allocation40_spill]] %s2938_s12 }
   0xd   :  { %2976 = sst [smem:[#allocation41_spill]] %s2939_s13 }
   0xe   :  { %2977 = sst [smem:[#allocation42_spill]] %s2940_s14 }
   0xf   :  { %19 = vsyncpa [#allocation5], 0 }
  0x10   :  { %21 = vsyncpa [#allocation5 + $0x1], 0 }
  0x11   :  { %22 = vsyncpa [#allocation8], 0 }
  0x12   :  { %24 = vsyncpa [#allocation8 + $0x1], 0 }
  0x13   :  { %25 = vsyncpa [#allocation6], 0 }
  0x14   :  { %27 = vsyncpa [#allocation6 + $0x1], 0  ;;  %s2384_s29 = smov 0   ;;  %s2386_s30 = smov 0  }
  0x15   :  { %s2388_s15 = smov 0   ;;  %s2390_s16 = smov 0  }
  0x16   :  { %s2392_s17 = smov 0   ;;  %s2394_s18 = smov 0  }
  0x17   :  { %s2396_s19 = smov 0   ;;  %s2398_s20 = smov 0  }
  0x18   :  { %s2400_s21 = smov 0   ;;  %s2402_s22 = smov 0  }
  0x19   :  { %s2404_s23 = smov 0  }
  0x1a LB: > { %2978 = sst [smem:[#allocation13_spill]] %s2256_s30  ;;  %s1763_s24 = sadd.s32 4294967295, %s2292_s23   ;;  %s2292_s23 = sphi %s2404_s23, %s33_s23   ;;  %s2288_s22 = sphi %s2402_s22, %s3053_s22   ;;  %s2284_s21 = sphi %s2400_s21, %s3052_s21   ;;  %s2280_s20 = sphi %s2398_s20, %s3051_s20   ;;  %s2276_s19 = sphi %s2396_s19, %s3050_s19   ;;  %s2272_s18 = sphi %s2394_s18, %s3049_s18   ;;  %s2268_s17 = sphi %s2392_s17, %s3048_s17   ;;  %s2264_s16 = sphi %s2390_s16, %s3047_s16   ;;  %s2260_s15 = sphi %s2388_s15, %s3046_s15   ;;  %s2256_s30 = sphi %s2386_s30, %s3045_s30   ;;  %s2252_s29 = sphi %s2384_s29, %s3044_s29  }
  0x1b   : > { %2979 = sst [smem:[#allocation14_spill]] %s2260_s15  ;;  %s1764_s25 = sadd.s32 4294967294, %s2292_s23  }
  0x1c   : > { %2980 = sst [smem:[#allocation15_spill]] %s2264_s16  ;;  %p59_p0 = scmp.ne.s32.totalorder %s2272_s18, %s2268_s17 }
  0x1d   : > { %2981 = sst [smem:[#allocation16_spill]] %s2268_s17  ;;  %p2947_p1 = scmp.eq.s32.totalorder %s2292_s23, 0 }
  0x1e   : > { %2982 = sst [smem:[#allocation17_spill]] %s2272_s18  ;;  %p65_p2 = scmp.ne.s32.totalorder %s2268_s17, %s2264_s16 }
  0x1f   : > { %2983 = sst [smem:[#allocation18_spill]] %s2280_s20  ;;  %p2448_p3 = scmp.eq.s32.totalorder %s1763_s24, 0 }
  0x20   : > { %2984 = sst [smem:[#allocation19_spill]] %s2284_s21  ;;  %p2454_p4 = por %p2947_p1, %p59_p0 }
  0x21   : > { %2985 = sst [smem:[#allocation20_spill]] %s2288_s22  ;;  %p427_p5 = scmp.eq.s32.totalorder %s1763_s24, 3 }
  0x22   : > { %2986 = sst [smem:[#allocation21_spill]] %s2292_s23  ;;  %p2460_p6 = por %p2448_p3, %p65_p2 }
  0x23   : > { %p433_p7 = scmp.eq.s32.totalorder %s1764_s25, 3  ;;  %p2464_p8 = por %p427_p5, %p59_p0 }
  0x24   : > { %s2989_s26 = scalar_select %p2460_p6, 1, 0 }
  0x25   : > { %s2990_s27 = scalar_select %p2464_p8, 1, 0 }
  0x26   : > { %p2468_p9 = por %p433_p7, %p65_p2  ;;  %p2946_p10 = scmp.lt.s32.totalorder %s2292_s23, 4 }
  0x27   : > { %2991 = sst [smem:[#allocation22_spill]] %s2990_s27  ;;  %s453_s13 = sand.u32 1, %s2272_s18  }
  0x28   : > { %s2992_s16 = scalar_select %p2468_p9, 1, 0 }
  0x29   : > { %s1830_s12 = sshll.u32 %s2288_s22, 8  ;;  %s1767_s11 = sshll.u32 %s453_s13, 4 }
  0x2a   : > { %2993 = sst [smem:[#allocation23_spill]] %s2992_s16  ;;  %s2994_s0 = sld [smem:[#allocation29_spill]] }
  0x2b   : > { %s457_s25 = scalar_lea.vmem [#allocation4], %s1767_s11  ;;  %p2484_p11 = pnand %p2946_p10, %p2454_p4 }
  0x2c   : > { %s464_s7 = sshll.u32 %s457_s25, 4  ;;  %s2490_s16 = scalar_lea.sflag [#allocation5], %s453_s13  ;;  %s2488_s7 = int_to_ptr.vmem [resolvable:$true] %s464_s7 }
  0x2d   : > { %p2108_p13 = pneg %p2484_p11 }
  0x30   : > { %s2478_s9 = scalar_lea.hbm %s2994_s0, %s1830_s12  ;;  %s2111_s14 = scalar_lea.hbm %s2994_s0, 512 }
  0x31   : > { %s2106_s10 = scalar_lea.hbm %s2478_s9, 256  ;;  %p2112_p4 = scmp.lt.u32.totalorder %s2478_s9, %s2994_s0 }
  0x32   : > { %p2107_p12 = scmp.ne.s32.totalorder %s2478_s9, %s2106_s10  ;;  %p2113_p5 = scmp.lt.u32.totalorder %s2111_s14, %s2106_s10 }
  0x33   : > { %p2115_p10 = scmp.lt.u32.totalorder %s2106_s10, %s2478_s9 }
  0x34   : > { %p2109_p0 = pnand %p2108_p13, %p2107_p12  ;;  %p2114_p7 = por %p2113_p5, %p2112_p4 }
  0x36   : > { %p2110_p2 = pneg %p2109_p0  ;;  %p2116_p1 = por %p2115_p10, %p2114_p7 }
  0x38   : > { %p2117_p9 = pnand %p2116_p1, %p2110_p2 }
  0x3a   : > { %2120 = shalt.err (!%p2117_p9)
}
  0x3b   : > { %s2121_s13 = scalar_lea.vmem %s2488_s7, 256  ;;  %s2294_s11 = smov [#allocation4]  }
  0x3c   : > { %p2122_p12 = scmp.ne.s32.totalorder %s2488_s7, %s2121_s13  ;;  %s2126_s12 = sshll.u32 %s2294_s11, 4  ;;  %s2127_s12 = int_to_ptr.vmem [resolvable:$false] %s2126_s12 }
  0x3d   : > { %s2128_s24 = scalar_lea.vmem %s2127_s12, 512  ;;  %p2129_p6 = scmp.lt.s32.totalorder %s2488_s7, %s2127_s12 }
  0x3e   : > { %p2124_p0 = pnand %p2122_p12, %p2108_p13  ;;  %p2130_p4 = scmp.lt.s32.totalorder %s2128_s24, %s2121_s13 }
  0x40   : > { %p2125_p8 = pneg %p2124_p0  ;;  %p2131_p5 = por %p2130_p4, %p2129_p6 }
  0x42   : > { %p2132_p10 = pnand %p2131_p5, %p2125_p8 }
  0x44   : > { %2135 = shalt.err (!%p2132_p10)
}
  0x45   : > { %s2295_s10 = smov 128   ;;  %s2296_s14 = smov 8  }
  0x46   : > { %1940 = dma.hbm_to_vmem [thread:$0]  (!%p2484_p11), %s2478_s9, 256, %s2488_s7, %s2490_s16, %s2295_s10, %s2295_s10, %s2296_s14  }
  0x47   : > { %p1773_p1 = scmp.ge.s32.totalorder %s2292_s23, 1  ;;  %p572_p6 = scmp.lt.s32.totalorder %s2292_s23, 5 }
  0x48   : > { %s42_s13 = sadd.s32 1, %s2284_s21  ;;  %s260_s11 = sadd.s32 1, %s2260_s15 }
  0x49   : > { %p2520_p8 = pnand %p1773_p1, %p572_p6  ;;  %p43_p9 = scmp.ge.s32.totalorder %s42_s13, 2 }
  0x4a   : > { %p267_p13 = scmp.ne.s32.totalorder %s2260_s15, %s2256_s30  ;;  %p273_p2 = scmp.ne.s32.totalorder %s2256_s30, %s2252_s29 }
  0x4b   : > { %s3055_s13 = smov (%p43_p9, %s42_s13), 0  ;;  %s2998_s7 = sadd.s32 1, %s2288_s22 }
  0x4c   : > { %2997 = sst [smem:[#allocation24_spill]] %s3055_s13  ;;  %s3057_s7 = smov (!%p43_p9, %s2998_s7), %s2288_s22 }
  0x4d   : > { %s257_s9 = ssub.s32 %s2284_s21, %s3055_s13  ;;  %p2999_p11 = scmp.eq.s32.totalorder %s2292_s23, 0 }
  0x4e   : > { %p47_p12 = scmp.ge.s32.totalorder %s3057_s7, 2  ;;  %p258_p0 = scmp.eq.s32.totalorder %s257_s9, 0 }
  0x4f   : > { %p2539_p7 = por %p267_p13, %p2999_p11  ;;  %p2545_p4 = por %p273_p2, %p2448_p3 }
  0x50   : > { %s521_s29 = sand.u32 1, %s2260_s15   ;;  %s3059_s7 = smov (%p47_p12, %s3057_s7), 0 }
  0x51   : > { %s3001_s27 = scalar_select %p2545_p4, 1, 0 }
  0x52   : > { %3002 = sst [smem:[#allocation25_spill]] %s3059_s7  ;;  %s49_s24 = ssub.s32 %s2288_s22, %s3059_s7 }
  0x53   : > { %s2553_s12 = scalar_select %p258_p0, %s2260_s15, %s260_s11  }
  0x54   : > { %p50_p5 = scmp.eq.s32.totalorder %s49_s24, 0  ;;  %s1770_s10 = sshll.u32 %s521_s29, 5 }
  0x55   : > { %3003 = sst [smem:[#allocation26_spill]] %s2553_s12  ;;  %s1831_s14 = sshll.u32 %s2284_s21, 9 }
  0x56   : > { %s3004_s0 = sadd.s32 1, %s2272_s18  ;;  %s3006_s8 = sld [smem:[#allocation36_spill]] }
  0x57   : > { %s2561_s13 = scalar_select %p50_p5, %s2272_s18, %s3004_s0  }
  0x58   : > { %s525_s4 = scalar_lea.vmem [#allocation7], %s1770_s10  ;;  %p3007_p3 = scmp.lt.s32.totalorder %s2292_s23, 4 }
  0x59   : > { %3005 = sst [smem:[#allocation27_spill]] %s2561_s13  ;;  %s532_s5 = sshll.u32 %s525_s4, 4  ;;  %s2568_s5 = int_to_ptr.vmem [resolvable:$true] %s532_s5 }
  0x5a   : > { %p2574_p10 = pnand %p3007_p3, %p2539_p7  ;;  %s2578_s0 = scalar_lea.sflag [#allocation8], %s521_s29 }
  0x5c   : > { %s2566_s28 = scalar_lea.hbm %s3006_s8, %s1831_s14  ;;  %p2138_p6 = pneg %p2574_p10 }
  0x5d   : > { %s2136_s6 = scalar_lea.hbm %s2566_s28, 512  ;;  %s2141_s16 = scalar_lea.hbm %s3006_s8, 1024 }
  0x5e   : > { %p2137_p1 = scmp.ne.s32.totalorder %s2566_s28, %s2136_s6  ;;  %p2142_p2 = scmp.lt.u32.totalorder %s2566_s28, %s3006_s8 }
  0x5f   : > { %p2143_p11 = scmp.lt.u32.totalorder %s2141_s16, %s2136_s6  ;;  %p2145_p12 = scmp.lt.u32.totalorder %s2136_s6, %s2566_s28 }
  0x60   : > { %p2139_p9 = pnand %p2138_p6, %p2137_p1 }
  0x61   : > { %p2144_p7 = por %p2143_p11, %p2142_p2 }
  0x62   : > { %p2140_p13 = pneg %p2139_p9 }
  0x63   : > { %p2146_p0 = por %p2145_p12, %p2144_p7 }
  0x65   : > { %p2147_p5 = pnand %p2146_p0, %p2140_p13 }
  0x67   : > { %2150 = shalt.err (!%p2147_p5)
}
  0x68   : > { %s2151_s29 = scalar_lea.vmem %s2568_s5, 512  ;;  %s2297_s9 = smov [#allocation7]  }
  0x69   : > { %p2152_p3 = scmp.ne.s32.totalorder %s2568_s5, %s2151_s29  ;;  %s2156_s4 = sshll.u32 %s2297_s9, 4  ;;  %s2157_s4 = int_to_ptr.vmem [resolvable:$false] %s2156_s4 }
  0x6a   : > { %s2158_s24 = scalar_lea.vmem %s2157_s4, 1024  ;;  %p2159_p4 = scmp.lt.s32.totalorder %s2568_s5, %s2157_s4 }
  0x6b   : > { %p2154_p1 = pnand %p2152_p3, %p2138_p6  ;;  %p2160_p2 = scmp.lt.s32.totalorder %s2158_s24, %s2151_s29 }
  0x6d   : > { %p2155_p9 = pneg %p2154_p1  ;;  %p2161_p11 = por %p2160_p2, %p2159_p4 }
  0x6f   : > { %p2162_p7 = pnand %p2161_p11, %p2155_p9 }
  0x71   : > { %2165 = shalt.err (!%p2162_p7)
}
  0x72   : > { %s2298_s6 = smov 64   ;;  %s2299_s16 = smov 4  }
  0x73   : > { %1943 = dma.hbm_to_vmem [thread:$0]  (!%p2574_p10), %s2566_s28, 512, %s2568_s5, %s2578_s0, %s2298_s6, %s2298_s6, %s2299_s16  }
  0x74   : > { %576 = sbr.rel (%p2520_p8) target bundleno = 2732 (0xaac), region = 76 }
  0x7b   : > { %s2609_s10 = sand.u32 1, %s2268_s17   ;;  %p3009_p4 = scmp.ne.s32.totalorder %s2989_s26, 0 }
  0x7c   : > { %s2952_s14 = sshll.u32 %s2609_s10, 4  ;;  %s579_s29 = scalar_lea.sflag [#allocation5], %s2609_s10 }
  0x7d   : > { %s2615_s9 = scalar_lea.vmem [#allocation4], %s2952_s14 }
  0x7e   : > { %2239 = dma.done.wait (%p3009_p4), %s579_s29, 256  }
  0x7f   : > { %2241 = vsyncadd (%p3009_p4), %s579_s29, 4294967040  ;;  %s587_s5 = sand.u32 1, %s2256_s30   ;;  %p3011_p8 = scmp.ne.s32.totalorder %s3001_s27, 0 }
  0x80   : > { %s1775_s25 = sshll.u32 %s587_s5, 5  ;;  %s588_s28 = scalar_lea.sflag [#allocation8], %s587_s5 }
  0x81   : > { %s2622_s11 = scalar_lea.vmem [#allocation7], %s1775_s25 }
  0x82   : > { %3010 = sst [smem:[#allocation28_spill]] %s2622_s11 }
  0x83   : > { %2243 = dma.done.wait (%p3011_p8), %s588_s28, 512  }
  0x84   : > { %2245 = vsyncadd (%p3011_p8), %s588_s28, 4294966784  ;;  %p684_p10 = scmp.lt.s32.totalorder %s2280_s20, 1  ;;  %p687_p6 = scmp.lt.s32.totalorder %s2276_s19, 1 }
  0x85   : > { %s3012_s2 = sld [smem:[#allocation30_spill]]  ;;  %s3013_s3 = sld [smem:[#allocation31_spill]] }
  0x86   : > { %s2631_s26 = scalar_select %p684_p10, %s2280_s20, 1 }
  0x87   : > { %s2634_s0 = scalar_select %p687_p6, %s2276_s19, 1 }
  0x88   : > { %s3015_s27 = sld [smem:[#allocation32_spill]]  ;;  %s3019_s22 = sld [smem:[#allocation38_spill]] }
  0x89   : > { %s1832_s6 = sshll.u32 %s2634_s0, 6  ;;  %s1779_s16 = sshll.u32 %s2634_s0, 1 }
  0x8a   : > { %s1833_s14 = sshll.u32 %s2634_s0, 5  ;;  %s3021_s12 = sld [smem:[#allocation40_spill]] }
  0x8b   : > { %s2645_s25 = scalar_lea.vmem %s3012_s2, %s1832_s6  ;;  %s2650_s24 = scalar_lea.vmem %s3013_s3, %s1779_s16 }
  0x8c   : > { %s3018_s3 = sld [smem:[#allocation37_spill]]  ;;  %s3022_s30 = sld [smem:[#allocation41_spill]] }
  0x8d   : > { %s3023_s28 = sshll.u32 %s2609_s10, 4  ;;  %p1784_p13 = scmp.ne.s32.totalorder %s2276_s19, 0 }
  0x8e   : > { %s2660_s17 = scalar_lea.vmem %s3015_s27, %s1833_s14  ;;  %s2677_s7 = scalar_lea.vmem %s3019_s22, %s1832_s6  ;;  %v732_v0 = vld [vmem:[%s2615_s9] sm:$0xff] (!%p1784_p13)  ;;  %vm734_vm0 = vcmask (!%p1784_p13), 523264   ;;  %v733_v1 = vld [vmem:[%s2615_s9 + $0x8] sm:$0xff] (!%p1784_p13) }
  0x8f   : > { %s3020_s14 = sld [smem:[#allocation39_spill]]  ;;  %s2693_s16 = scalar_lea.vmem [#allocation9], %s3023_s28  ;;  %735 = vst.msk [vmem:[#allocation2] sm:$0xff] (!%p1784_p13), %vm734_vm0, %v732_v0  ;;  %736 = vst.msk [vmem:[#allocation2 + $0x8] sm:$0xff] (!%p1784_p13), %vm734_vm0, %v733_v1 }
  0x90   : > { %s723_s29 = scalar_lea.vmem %s3021_s12, %s2634_s0  ;;  %731 = sbr.rel (%p1784_p13) target bundleno = 151 (0x97), region = 88 }
  0x92   : > { %s712_s20 = scalar_lea.vmem %s3018_s3, %s2634_s0  ;;  %s726_s23 = scalar_lea.vmem %s3022_s30, %s2634_s0 }
  0x95   : > { %s720_s27 = scalar_lea.vmem %s3020_s14, %s2634_s0 }
  0x97 PF: > { %v2050_v2 = vld [vmem:[%s2645_s25 + $0x4] ss:$8 sps:$4 sm:$0xff]   ;;  %v2052_v3 = vld [vmem:[%s2645_s25] ss:$8 sps:$4 sm:$0xff]   ;;  %v2300_v4 = vmov 0   ;;  %vm803_vm1 = vcmask 523264   ;;  %v753_v14 = vlaneseq }
  0x98   : > { %839 = vmatprep.mubr.bf16.mxu1 %v2300_v4  ;;  %807 = vmatprep.subr.bf16.mxu1 %v2050_v2  ;;  %v2053_v5 = vld [vmem:[%s2645_s25 + $0x14] ss:$8 sps:$4 sm:$0xff]   ;;  %v2055_v6 = vld [vmem:[%s2645_s25 + $0x10] ss:$8 sps:$4 sm:$0xff]   ;;  %v2056_v7 = vld [vmem:[%s2645_s25 + $0x24] ss:$8 sps:$4 sm:$0xff]  }
  0x99   : > { %808 = vmatpush1.bf16.msra.mxu1 %v2052_v3  ;;  %v2058_v8 = vld [vmem:[%s2645_s25 + $0x20] ss:$8 sps:$4 sm:$0xff]   ;;  %v2059_v9 = vld [vmem:[%s2645_s25 + $0x34] ss:$8 sps:$4 sm:$0xff]   ;;  %v2061_v10 = vld [vmem:[%s2645_s25 + $0x30] ss:$8 sps:$4 sm:$0xff]   ;;  %s3024_s25 = scalar_lea.vmem %s2927_s1, %s2631_s26 }
  0x9a   : > { %809 = vmatprep.subr.bf16.mxu1 %v2053_v5  ;;  %v2706_v11 = vld [vmem:[#allocation2] sm:$0xff]  ;;  %v2708_v12 = vld [vmem:[#allocation2 + $0x8] sm:$0xff]  ;;  %v754_v15 = vshrl.u32 %v753_v14, 7  ;;  %v2301_v16 = vmov 0.0   ;;  %vm2302_vm2 = vmmov 0   ;;  %s2303_s3 = smov 96  }
  0x9b   : > { %v742_v13 = vpack.c.bf16 %v2708_v12, %v2706_v11  ;;  %1875 = vmatprep.subr.bf16.mxu0 %v2301_v16  ;;  %v751_v18 = vld [vmem:[%s2650_s24] sm:$0x3]  ;;  %1877 = vmatprep.mubr.msk.bf16.mxu0 %vm2302_vm2, %v2301_v16  ;;  %s2304_s21 = smov 64   ;;  %s2305_s9 = smov 32   ;;  %vm855_vm3 = vcmask 261120   ;;  %vm913_vm4 = vcmask 130048  }
  0x9c   : > { %v755_v17 = vsub.s32 0, %v754_v15  ;;  %v759_v19 = vsub.s32 1, %v754_v15  ;;  %v739_v37 = vld [vmem:[%s3024_s25] sm:$0x1]  ;;  %vm1117_vm5 = vcmask 523520   ;;  %s3025_s24 = sld [smem:[#allocation33_spill]] }
  0x9d   : > { %810 = vmatpush1.bf16.msra.mxu1 %v2055_v6  ;;  %v1785_v38 = vadd.f32 -1.0, %v739_v37  ;;  %s3027_s28 = sld [smem:[#allocation28_spill]]  ;;  %s3030_s15 = sld [smem:[#allocation35_spill]] }
  0x9e   : > { %811 = vmatprep.subr.bf16.mxu1 %v2056_v7  ;;  %v756_v20 = vrot.slane %v751_v18, %v755_v17  ;;  %v760_v22 = vrot.slane %v751_v18, %v759_v19  ;;  %s3028_s22 = sld [smem:[#allocation34_spill]]  ;;  %p1824_p12 = scmp.ne.s32.totalorder %s2276_s19, 1 }
  0x9f   : > { %v741_v39 = vmul.f32 1e+09, %v1785_v38  ;;  %v2064_v38 = vld [vmem:[%s2660_s17 + $0x10] sm:$0xff]  }
  0xa1   : > { %812 = vmatpush1.bf16.msra.mxu1 %v2058_v8  ;;  %v909_v40 = vrot.slane %v741_v39, %v755_v17 }
  0xa2   : > { %813 = vmatprep.subr.bf16.mxu1 %v2059_v9  ;;  %s3026_s5 = scalar_lea.vmem %s3025_s24, %s2634_s0 }
  0xa3   : > { %s3031_s12 = scalar_lea.vmem %s3030_s15, %s2634_s0 }
  0xa4   : > { %s3029_s18 = scalar_lea.vmem %s3028_s22, %s2634_s0 }
  0xa5   : > { %814 = vmatpush1.bf16.msra.mxu1 %v2061_v10 }
  0xa6   : > { %1863 = vmatprep.subr.bf16.mxu1 %v2301_v16 }
  0xa8   : > { %1794 = vmatmul.mubr.msk.bf16.vlgmr.msra.gmra.mrb[0].mxu1 %vm803_vm1, %v742_v13 }
  0xa9   : > { %1865 = vmatprep.mubr.msk.bf16.mxu1 %vm2302_vm2, %v2301_v16 }
 0x17b   : > { %v841_v21 = vpop.f32.mrb[0].mxu1 }
 0x17c   : > { %v843_v23 = vpop.f32.mrb[1].mxu1  ;;  %v842_v25 = vadd.f32 %v841_v21, %v756_v20 }
 0x17d   : > { %v845_v24 = vpop.f32.mrb[2].mxu1  ;;  %v844_v28 = vadd.f32 %v843_v23, %v760_v22 }
 0x17e   : > { %v846_v26 = vadd.f32 %v845_v24, %v756_v20  ;;  %v847_v27 = vpop.f32.mrb[3].mxu1 }
 0x17f   : > { %v848_v29 = vadd.f32 %v847_v27, %v760_v22 }
 0x180   : > { %v850_v30 = vpack.c.bf16 %v846_v26, %v842_v25 }
 0x181   : > { %v2720_v31 = vpack.c.bf16 %v848_v29, %v844_v28 }
 0x182   : > { %983 = vrot.lane.b32.xlu1 %v850_v30, %s2303_s3  ;;  %853 = vrot.lane.b32.xlu0 %v850_v30, %s2304_s21 }
 0x186   : > { %985 = vrot.lane.b32.xlu0 %v850_v30, %s2305_s9 }
 0x1f4   : > { %v854_v32 = vpop.permute.xlu0 %853  ;;  %v984_v36 = vpop.permute.xlu1 %983 }
 0x1f5   : > { %v860_v33 = vsel %vm855_vm3, %v854_v32, 0 }
 0x1f6   : > { %1864 = vmatpush3.bf16.xpose.msra.mxu1 %v860_v33 }
 0x1f7   : > { %1869 = vmatprep.subr.bf16.mxu1 %v2301_v16 }
 0x1f8   : > { %v986_v34 = vpop.permute.xlu0 %985 }
 0x1f9   : > { %v991_v35 = vsel %vm855_vm3, %v986_v34, 0 }
 0x1fa   : > { %1876 = vmatpush3.bf16.xpose.msra.mxu0 %v991_v35  ;;  %v2062_v35 = vld [vmem:[%s2660_s17] sm:$0xff]  }
 0x1fb   : > { %1887 = vmatprep.subr.bf16.mxu0 %v2301_v16 }
 0x1fd   : > { %1866 = vmatmul.mubr.msk.bf16.vlgmr.msra.gmra.mrb[4].mxu1 %vm855_vm3, %v850_v30 }
 0x1fe   : > { %1870 = vmatpush3.bf16.msra.mxu1 %v2720_v31  ;;  %1871 = vmatprep.mubr.msk.bf16.mxu1 %vm2302_vm2, %v2301_v16 }
 0x1ff   : > { %1881 = vmatprep.subr.bf16.mxu1 %v2301_v16 }
 0x201   : > { %1878 = vmatmul.mubr.msk.bf16.vlgmr.msra.gmra.mrb[0].mxu0 %vm855_vm3, %v984_v36  ;;  %v2063_v36 = vld [vmem:[%s2660_s17 + $0x8] sm:$0xff]  }
 0x202   : > { %1895 = vmatprep.mubr.msk.bf16.mxu0 %vm2302_vm2, %v2301_v16  ;;  %1888 = vmatpush3.bf16.msra.mxu0 %v2062_v35  ;;  %v2074_v35 = vld [vmem:[%s2677_s7 + $0x20] sm:$0xff]  }
 0x203   : > { %1889 = vmatprep.subr.bf16.mxu0 %v2301_v16 }
 0x206   : > { %1890 = vmatpush3.bf16.msra.mxu0 %v2063_v36  ;;  %v2075_v36 = vld [vmem:[%s2677_s7 + $0x28] sm:$0xff]  }
 0x207   : > { %1891 = vmatprep.subr.bf16.mxu0 %v2301_v16 }
 0x20a   : > { %1892 = vmatpush3.bf16.msra.mxu0 %v2064_v38  ;;  %v2077_v38 = vld [vmem:[%s2677_s7 + $0x38] sm:$0xff]  }
 0x20b   : > { %1893 = vmatprep.subr.bf16.mxu0 %v2301_v16 }
 0x2d0   : > { %v896_v41 = vpop.f32.mrb[4].mxu1 }
 0x2d1   : > { %v903_v42 = vmul.f32 0.17677669, %v896_v41  ;;  %v1867_v43 = vpop.f32.mrb[5].mxu1  ;;  %v2065_v41 = vld [vmem:[%s2660_s17 + $0x18] sm:$0xff]  }
 0x2d2   : > { %v899_v44 = vpop.f32.mrb[6].mxu1  ;;  %1894 = vmatpush3.bf16.msra.mxu0 %v2065_v41 }
 0x2d3   : > { %v904_v45 = vmul.f32 0.17677669, %v899_v44  ;;  %v1868_v46 = vpop.f32.mrb[7].mxu1  ;;  %v911_v47 = vadd.f32 %v909_v40, %v903_v42  ;;  %1911 = vmatprep.subr.bf16.mxu0 %v2301_v16 }
 0x2d4   : > { %v1027_v48 = vpop.f32.mrb[0].mxu0 }
 0x2d5   : > { %v1034_v49 = vmul.f32 0.17677669, %v1027_v48  ;;  %v1879_v50 = vpop.f32.mrb[1].mxu0  ;;  %v914_v51 = vsel %vm913_vm4, %v911_v47, -inf  ;;  %v912_v52 = vadd.f32 %v909_v40, %v904_v45 }
 0x2d6   : > { %915 = vmax.xlane.f32.xlu1 %v914_v51  ;;  %v1030_v53 = vpop.f32.mrb[2].mxu0 }
 0x2d7   : > { %v1035_v54 = vmul.f32 0.17677669, %v1030_v53  ;;  %v1880_v55 = vpop.f32.mrb[3].mxu0  ;;  %v917_v56 = vsel %vm913_vm4, %v912_v52, -inf  ;;  %v1036_v57 = vadd.f32 %v1034_v49, %v909_v40 }
 0x2d8   : > { %918 = vmax.xlane.f32.xlu0 %v917_v56 }
 0x2d9   : > { %v1037_v58 = vadd.f32 %v1035_v54, %v909_v40  ;;  %v1038_v59 = vsel %vm913_vm4, %v1036_v57, -inf }
 0x2db   : > { %v1041_v60 = vsel %vm913_vm4, %v1037_v58, -inf }
 0x2dc   : > { %1039 = vmax.xlane.f32.xlu0 %v1038_v59  ;;  %1042 = vmax.xlane.f32.xlu1 %v1041_v60 }
 0x363   : > { %v916_v61 = vpop.xlane.xlu1 %915 }
 0x364   : > { %v920_v62 = vsub.f32 %v911_v47, %v916_v61 }
 0x365   : > { %v919_v63 = vpop.xlane.xlu0 %918 }
 0x366   : > { %v922_v0 = vmul.f32 1.442695, %v920_v62  ;;  %v921_v1 = vsub.f32 %v912_v52, %v919_v63  ;;  %v1799_v52 = vld [vmem:[%s3026_s5] ss:$0 sm:$0xff] }
 0x368   : > { %2078 = vpow2.f32 %v922_v0  ;;  %v924_v2 = vmul.f32 1.442695, %v921_v1 }
 0x369   : > { %v1043_v3 = vpop.xlane.xlu1 %1042  ;;  %v1040_v4 = vpop.xlane.xlu0 %1039 }
 0x36a   : > { %2080 = vpow2.f32 %v924_v2  ;;  %v1045_v5 = vsub.f32 %v1037_v58, %v1043_v3  ;;  %v1044_v6 = vsub.f32 %v1036_v57, %v1040_v4 }
 0x36c   : > { %v1048_v7 = vmul.f32 1.442695, %v1045_v5  ;;  %v1046_v8 = vmul.f32 1.442695, %v1044_v6 }
 0x36e   : > { %2082 = vpow2.f32 %v1048_v7  ;;  %v2066_v7 = vld [vmem:[%s3027_s28] sm:$0xff]  }
 0x36f   : > { %2084 = vpow2.f32 %v1046_v8  ;;  %v2067_v8 = vld [vmem:[%s3027_s28 + $0x8] sm:$0xff]  }
 0x372   : > { %v2079_v9 = vpop.eup %2078 }
 0x373   : > { %v926_v10 = vsel %vm913_vm4, %v2079_v9, 0.0 }
 0x374   : > { %v2081_v13 = vpop.eup %2080  ;;  %927 = vadd.xlane.f32.xlu0 %v926_v10  ;;  %v2069_v10 = vld [vmem:[%s3027_s28 + $0x18] sm:$0xff]  }
 0x375   : > { %v929_v14 = vsel %vm913_vm4, %v2081_v13, 0.0 }
 0x376   : > { %930 = vadd.xlane.f32.xlu1 %v929_v14 }
 0x378   : > { %v2083_v15 = vpop.eup %2082 }
 0x379   : > { %v2085_v17 = vpop.eup %2084  ;;  %v1053_v18 = vsel %vm913_vm4, %v2083_v15, 0.0 }
 0x37a   : > { %1054 = vadd.xlane.f32.xlu1 %v1053_v18  ;;  %v1050_v19 = vsel %vm913_vm4, %v2085_v17, 0.0 }
 0x37b   : > { %1051 = vadd.xlane.f32.xlu0 %v1050_v19 }
 0x391   : > { %1062 = vrot.lane.b32.xlu0 %v2720_v31, %s2303_s3 }
 0x401   : > { %v928_v20 = vpop.xlane.xlu0 %927 }
 0x402   : > { %2086 = vrcp.f32 %v928_v20 }
 0x403   : > { %v931_v21 = vpop.xlane.xlu1 %930 }
 0x404   : > { %2088 = vrcp.f32 %v931_v21 }
 0x407   : > { %v1055_v22 = vpop.xlane.xlu1 %1054 }
 0x408   : > { %2090 = vrcp.f32 %v1055_v22  ;;  %v1052_v23 = vpop.xlane.xlu0 %1051  ;;  %v1805_v22 = vld [vmem:[%s3029_s18] ss:$0 sm:$0xff] }
 0x409   : > { %2092 = vrcp.f32 %v1052_v23 }
 0x40c   : > { %v2087_v24 = vpop.eup %2086  ;;  %v1063_v32 = vpop.permute.xlu0 %1062 }
 0x40d   : > { %v934_v26 = vmul.f32 %v2087_v24, %v2079_v9  ;;  %v2068_v9 = vld [vmem:[%s3027_s28 + $0x10] sm:$0xff]  }
 0x40e   : > { %v2089_v25 = vpop.eup %2088 }
 0x40f   : > { %v935_v27 = vmul.f32 %v2089_v25, %v2081_v13 }
 0x411   : > { %v936_v28 = vpack.c.bf16 %v935_v27, %v934_v26  ;;  %v1806_v26 = vld [vmem:[%s3031_s12] ss:$0 sm:$0xff] }
 0x412   : > { %v2091_v29 = vpop.eup %2090 }
 0x413   : > { %v2093_v30 = vpop.eup %2092  ;;  %1872 = vmatmul.mubr.msk.bf16.vlgmr.msra.gmra.mrb[8].mxu1 %vm913_vm4, %v936_v28  ;;  %v1059_v31 = vmul.f32 %v2091_v29, %v2083_v15 }
 0x414   : > { %1882 = vmatpush3.bf16.msra.mxu1 %v1063_v32  ;;  %1883 = vmatprep.mubr.msk.bf16.mxu1 %vm2302_vm2, %v2301_v16  ;;  %v1058_v33 = vmul.f32 %v2093_v30, %v2085_v17  ;;  %v2070_v32 = vld [vmem:[%s2677_s7] sm:$0xff]  }
 0x415   : > { %1899 = vmatprep.subr.bf16.mxu1 %v2301_v16 }
 0x416   : > { %v1060_v34 = vpack.c.bf16 %v1059_v31, %v1058_v33  ;;  %v2071_v31 = vld [vmem:[%s2677_s7 + $0x8] sm:$0xff]   ;;  %v2072_v33 = vld [vmem:[%s2677_s7 + $0x10] sm:$0xff]  }
 0x41b   : > { %1884 = vmatmul.mubr.msk.bf16.vlgmr.msra.gmra.mrb[12].mxu1 %vm913_vm4, %v1060_v34  ;;  %v2073_v34 = vld [vmem:[%s2677_s7 + $0x18] sm:$0xff]  }
 0x41c   : > { %1907 = vmatprep.mubr.msk.bf16.mxu1 %vm2302_vm2, %v2301_v16  ;;  %1900 = vmatpush3.bf16.msra.mxu1 %v2066_v7 }
 0x41d   : > { %1901 = vmatprep.subr.bf16.mxu1 %v2301_v16 }
 0x420   : > { %1902 = vmatpush3.bf16.msra.mxu1 %v2067_v8 }
 0x421   : > { %1903 = vmatprep.subr.bf16.mxu1 %v2301_v16 }
 0x424   : > { %1904 = vmatpush3.bf16.msra.mxu1 %v2068_v9 }
 0x425   : > { %1905 = vmatprep.subr.bf16.mxu1 %v2301_v16 }
 0x428   : > { %1906 = vmatpush3.bf16.msra.mxu1 %v2069_v10 }
 0x4e6   : > { %v974_v37 = vpop.f32.mrb[8].mxu1 }
 0x4e7   : > { %981 = vst.msk [vmem:[#allocation3] sm:$0xff] %vm855_vm3, %v974_v37  ;;  %v1873_v39 = vpop.f32.mrb[9].mxu1  ;;  %v2076_v37 = vld [vmem:[%s2677_s7 + $0x30] sm:$0xff]  }
 0x4e8   : > { %v977_v40 = vpop.f32.mrb[10].mxu1  ;;  %v1807_v39 = vld [vmem:[%s712_s20] ss:$0 sm:$0xff] }
 0x4e9   : > { %982 = vst.msk [vmem:[#allocation3 + $0x8] sm:$0xff] %vm855_vm3, %v977_v40  ;;  %v1874_v42 = vpop.f32.mrb[11].mxu1 }
 0x4ee   : > { %v1102_v43 = vpop.f32.mrb[12].mxu1 }
 0x4ef   : > { %1111 = vrot.lane.b32.xlu1 %v1102_v43, %s2305_s9  ;;  %v1885_v44 = vpop.f32.mrb[13].mxu1 }
 0x4f0   : > { %v1105_v45 = vpop.f32.mrb[14].mxu1 }
 0x4f1   : > { %v1886_v46 = vpop.f32.mrb[15].mxu1 }
 0x4f3   : > { %1113 = vrot.lane.b32.xlu1 %v1105_v45, %s2305_s9 }
 0x561   : > { %v1112_v47 = vpop.permute.xlu1 %1111 }
 0x562   : > { %1118 = vst.msk [vmem:[#allocation3] sm:$0xff] %vm1117_vm5, %v1112_v47 }
 0x565   : > { %v1114_v48 = vpop.permute.xlu1 %1113 }
 0x566   : > { %1119 = vst.msk [vmem:[#allocation3 + $0x8] sm:$0xff] %vm1117_vm5, %v1114_v48 }
 0x569   : > { %v1120_v49 = vld [vmem:[#allocation3] sm:$0xff] }
 0x56d   : > { %v1121_v50 = vld [vmem:[#allocation3 + $0x8] sm:$0xff] }
 0x56e   : > { %v1122_v51 = vpack.c.bf16 %v1121_v50, %v1120_v49 }
 0x570   : > { %1896 = vmatmul.mubr.msk.bf16.vlgmr.msra.gmra.mrb[4].mxu0 %vm803_vm1, %v1122_v51 }
 0x571   : > { %1927 = vmatprep.mubr.msk.bf16.mxu0 %vm2302_vm2, %v2301_v16  ;;  %1912 = vmatpush3.bf16.msra.mxu0 %v2070_v32 }
 0x572   : > { %1913 = vmatprep.subr.bf16.mxu0 %v2301_v16 }
 0x575   : > { %1914 = vmatpush3.bf16.msra.mxu0 %v2071_v31  ;;  %v1823_v31 = vld [vmem:[%s726_s23] ss:$0 sm:$0xff] }
 0x576   : > { %1915 = vmatprep.subr.bf16.mxu0 %v2301_v16 }
 0x579   : > { %1916 = vmatpush3.bf16.msra.mxu0 %v2072_v33 }
 0x57a   : > { %1917 = vmatprep.subr.bf16.mxu0 %v2301_v16 }
 0x57d   : > { %1918 = vmatpush3.bf16.msra.mxu0 %v2073_v34 }
 0x57e   : > { %1919 = vmatprep.subr.bf16.mxu0 %v2301_v16 }
 0x581   : > { %1920 = vmatpush3.bf16.msra.mxu0 %v2074_v35 }
 0x582   : > { %1921 = vmatprep.subr.bf16.mxu0 %v2301_v16 }
 0x585   : > { %1922 = vmatpush3.bf16.msra.mxu0 %v2075_v36 }
 0x586   : > { %1923 = vmatprep.subr.bf16.mxu0 %v2301_v16 }
 0x589   : > { %1924 = vmatpush3.bf16.msra.mxu0 %v2076_v37 }
 0x58a   : > { %1925 = vmatprep.subr.bf16.mxu0 %v2301_v16 }
 0x58d   : > { %1926 = vmatpush3.bf16.msra.mxu0 %v2077_v38 }
 0x643   : > { %v1199_v53 = vpop.f32.mrb[4].mxu0 }
 0x644   : > { %v1200_v54 = vadd.f32 %v1799_v52, %v1199_v53  ;;  %v1897_v55 = vpop.f32.mrb[5].mxu0 }
 0x645   : > { %v1202_v56 = vpop.f32.mrb[6].mxu0 }
 0x646   : > { %v1203_v57 = vadd.f32 %v1799_v52, %v1202_v56  ;;  %v1898_v58 = vpop.f32.mrb[7].mxu0  ;;  %v1206_v59 = vadd.f32 %v1200_v54, %v2706_v11 }
 0x648   : > { %v1210_v60 = vsel %vm803_vm1, %v1206_v59, 0.0  ;;  %v1207_v61 = vadd.f32 %v1203_v57, %v2708_v12 }
 0x649   : > { %1211 = vadd.xlane.f32.xlu0 %v1210_v60 }
 0x64a   : > { %v1213_v62 = vsel %vm803_vm1, %v1207_v61, 0.0 }
 0x64b   : > { %1214 = vadd.xlane.f32.xlu1 %v1213_v62 }
 0x6d6   : > { %v1212_v63 = vpop.xlane.xlu0 %1211 }
 0x6d7   : > { %v1217_v0 = vmul.f32 0.015625, %v1212_v63 }
 0x6d8   : > { %v1215_v1 = vpop.xlane.xlu1 %1214 }
 0x6d9   : > { %v1219_v2 = vsub.f32 %v1206_v59, %v1217_v0  ;;  %v1218_v3 = vmul.f32 0.015625, %v1215_v1  ;;  %v1813_v0 = vld [vmem:[%s720_s27] ss:$0 sm:$0xff] }
 0x6db   : > { %v1220_v4 = vsub.f32 %v1207_v61, %v1218_v3  ;;  %v1221_v5 = vmul.f32 %v1219_v2, %v1219_v2 }
 0x6dd   : > { %v1223_v11 = vsel %vm803_vm1, %v1221_v5, 0.0  ;;  %v1222_v6 = vmul.f32 %v1220_v4, %v1220_v4 }
 0x6de   : > { %1224 = vadd.xlane.f32.xlu0 %v1223_v11 }
 0x6df   : > { %v1226_v12 = vsel %vm803_vm1, %v1222_v6, 0.0 }
 0x6e2   : > { %1227 = vadd.xlane.f32.xlu0 %v1226_v12 }
 0x76b   : > { %v1225_v13 = vpop.xlane.xlu0 %1224 }
 0x76c   : > { %v1229_v14 = vmul.f32 0.015625, %v1225_v13 }
 0x76e   : > { %v1231_v15 = vadd.f32 1e-12, %v1229_v14 }
 0x76f   : > { %v1228_v17 = vpop.xlane.xlu0 %1227 }
 0x770   : > { %2094 = vrsqrt.f32 %v1231_v15  ;;  %v1230_v18 = vmul.f32 0.015625, %v1228_v17 }
 0x772   : > { %v1232_v19 = vadd.f32 1e-12, %v1230_v18 }
 0x774   : > { %2096 = vrsqrt.f32 %v1232_v19 }
 0x77a   : > { %v2095_v20 = vpop.eup %2094 }
 0x77b   : > { %v1235_v21 = vmul.f32 %v2095_v20, %v1219_v2 }
 0x77d   : > { %v1243_v24 = vmul.f32 %v1805_v22, %v1235_v21 }
 0x77e   : > { %v2097_v23 = vpop.eup %2096 }
 0x77f   : > { %v1236_v25 = vmul.f32 %v2097_v23, %v1220_v4  ;;  %v2801_v28 = vadd.f32 %v1806_v26, %v1243_v24 }
 0x781   : > { %v1244_v27 = vmul.f32 %v1805_v22, %v1236_v25 }
 0x783   : > { %v2803_v29 = vadd.f32 %v1806_v26, %v1244_v27 }
 0x785   : > { %v1253_v30 = vpack.c.bf16 %v2803_v29, %v2801_v28 }
 0x787   : > { %1908 = vmatmul.mubr.msk.bf16.vlgmr.msra.gmra.mrb[16].mxu1 %vm803_vm1, %v1253_v30 }
 0x85a   : > { %v1330_v40 = vpop.f32.mrb[16].mxu1 }
 0x85b   : > { %v1331_v41 = vadd.f32 %v1807_v39, %v1330_v40  ;;  %v1909_v42 = vpop.f32.mrb[17].mxu1 }
 0x85c   : > { %v1333_v43 = vpop.f32.mrb[18].mxu1 }
 0x85d   : > { %v1337_v44 = vmul.f32 %v1331_v41, %v1331_v41  ;;  %v1334_v45 = vadd.f32 %v1807_v39, %v1333_v43  ;;  %v1910_v46 = vpop.f32.mrb[19].mxu1 }
 0x85f   : > { %v1339_v47 = vmul.f32 %v1337_v44, %v1331_v41  ;;  %v1338_v48 = vmul.f32 %v1334_v45, %v1334_v45 }
 0x861   : > { %v1341_v49 = vmul.f32 0.044715, %v1339_v47  ;;  %v1340_v50 = vmul.f32 %v1338_v48, %v1334_v45 }
 0x863   : > { %v1343_v51 = vadd.f32 %v1341_v49, %v1331_v41  ;;  %v1342_v16 = vmul.f32 0.044715, %v1340_v50 }
 0x865   : > { %v1345_v52 = vmul.f32 0.7978846, %v1343_v51  ;;  %v1344_v53 = vadd.f32 %v1342_v16, %v1334_v45 }
 0x867   : > { %2098 = vtanh.f32 %v1345_v52  ;;  %v1346_v54 = vmul.f32 0.7978846, %v1344_v53 }
 0x869   : > { %2100 = vtanh.f32 %v1346_v54 }
 0x871   : > { %v2099_v55 = vpop.eup %2098 }
 0x872   : > { %v1349_v56 = vadd.f32 1.0, %v2099_v55 }
 0x873   : > { %v2101_v57 = vpop.eup %2100 }
 0x874   : > { %v1351_v58 = vmul.f32 0.5, %v1349_v56  ;;  %v1350_v59 = vadd.f32 1.0, %v2101_v57 }
 0x876   : > { %v1352_v60 = vmul.f32 0.5, %v1350_v59  ;;  %v1353_v61 = vmul.f32 %v1351_v58, %v1331_v41 }
 0x878   : > { %v1354_v62 = vmul.f32 %v1352_v60, %v1334_v45 }
 0x87a   : > { %v1355_v63 = vpack.c.bf16 %v1354_v62, %v1353_v61 }
 0x87c   : > { %1928 = vmatmul.mubr.bf16.vlgmr.msra.gmra.mrb[8].mxu0 %v1355_v63 }
 0x94f   : > { %v1461_v1 = vpop.f32.mrb[8].mxu0 }
 0x950   : > { %v1462_v2 = vadd.f32 %v1813_v0, %v1461_v1  ;;  %v1929_v3 = vpop.f32.mrb[9].mxu0 }
 0x951   : > { %v1464_v4 = vpop.f32.mrb[10].mxu0 }
 0x952   : > { %v1465_v5 = vadd.f32 %v1813_v0, %v1464_v4  ;;  %v1930_v11 = vpop.f32.mrb[11].mxu0  ;;  %v1468_v6 = vadd.f32 %v1462_v2, %v2801_v28 }
 0x954   : > { %v1472_v12 = vsel %vm803_vm1, %v1468_v6, 0.0  ;;  %v1469_v7 = vadd.f32 %v1465_v5, %v2803_v29  ;;  %v1822_v29 = vld [vmem:[%s723_s29] ss:$0 sm:$0xff] }
 0x955   : > { %1473 = vadd.xlane.f32.xlu1 %v1472_v12 }
 0x956   : > { %v1475_v8 = vsel %vm803_vm1, %v1469_v7, 0.0 }
 0x957   : > { %1476 = vadd.xlane.f32.xlu0 %v1475_v8 }
 0x9e2   : > { %v1474_v9 = vpop.xlane.xlu1 %1473 }
 0x9e3   : > { %v1478_v10 = vmul.f32 0.015625, %v1474_v9 }
 0x9e4   : > { %v1477_v13 = vpop.xlane.xlu0 %1476 }
 0x9e5   : > { %v1480_v14 = vsub.f32 %v1468_v6, %v1478_v10  ;;  %v1479_v15 = vmul.f32 0.015625, %v1477_v13 }
 0x9e7   : > { %v1481_v17 = vsub.f32 %v1469_v7, %v1479_v15  ;;  %v1482_v18 = vmul.f32 %v1480_v14, %v1480_v14 }
 0x9e9   : > { %v1484_v19 = vsel %vm803_vm1, %v1482_v18, 0.0  ;;  %v1483_v20 = vmul.f32 %v1481_v17, %v1481_v17 }
 0x9ea   : > { %1485 = vadd.xlane.f32.xlu1 %v1484_v19 }
 0x9eb   : > { %v1487_v21 = vsel %vm803_vm1, %v1483_v20, 0.0 }
 0x9ec   : > { %1488 = vadd.xlane.f32.xlu0 %v1487_v21 }
 0xa77   : > { %v1486_v22 = vpop.xlane.xlu1 %1485 }
 0xa78   : > { %v1490_v23 = vmul.f32 0.015625, %v1486_v22 }
 0xa79   : > { %v1489_v24 = vpop.xlane.xlu0 %1488 }
 0xa7a   : > { %v1492_v25 = vadd.f32 1e-12, %v1490_v23  ;;  %v1491_v26 = vmul.f32 0.015625, %v1489_v24 }
 0xa7c   : > { %2102 = vrsqrt.f32 %v1492_v25  ;;  %v1493_v27 = vadd.f32 1e-12, %v1491_v26 }
 0xa7e   : > { %2104 = vrsqrt.f32 %v1493_v27 }
 0xa86   : > { %v2103_v28 = vpop.eup %2102 }
 0xa87   : > { %v1496_v30 = vmul.f32 %v2103_v28, %v1480_v14 }
 0xa88   : > { %v2105_v32 = vpop.eup %2104 }
 0xa89   : > { %v1504_v33 = vmul.f32 %v1822_v29, %v1496_v30  ;;  %v1497_v34 = vmul.f32 %v2105_v32, %v1481_v17  ;;  %1519 = sbr.rel (%p1824_p12) target bundleno = 2704 (0xa90), region = 92 }
 0xa8b   : > { %v1512_v35 = vadd.f32 %v1823_v31, %v1504_v33  ;;  %v1505_v36 = vmul.f32 %v1822_v29, %v1497_v34 }
 0xa8d   : > { %1514 = vst.msk [vmem:[#allocation2] sm:$0xff] %vm803_vm1, %v1512_v35  ;;  %v1513_v37 = vadd.f32 %v1823_v31, %v1505_v36  ;;  %1520 = vst.msk [vmem:[%s2693_s16] sm:$0xff] (!%p1824_p12), %vm803_vm1, %v1512_v35 }
 0xa8f   : > { %1515 = vst.msk [vmem:[#allocation2 + $0x8] sm:$0xff] %vm803_vm1, %v1513_v37  ;;  %1521 = vst.msk [vmem:[%s2693_s16 + $0x8] sm:$0xff] (!%p1824_p12), %vm803_vm1, %v1513_v37 }
 0xa90 PF: > { %s3036_s0 = sld [smem:[#allocation18_spill]]  ;;  %s3037_s29 = sld [smem:[#allocation22_spill]] }
 0xa91   : > { %s3038_s5 = sld [smem:[#allocation42_spill]]  ;;  %s1536_s4 = sshll.u32 %s2693_s16, 4  ;;  %s2863_s4 = int_to_ptr.vmem [resolvable:$true] %s1536_s4 }
 0xa92   : > { %s1523_s19 = scalar_lea.sflag [#allocation6], %s2609_s10  ;;  %s2166_s8 = scalar_lea.vmem %s2863_s4, 256 }
 0xa93   : > { %p2167_p0 = scmp.ne.s32.totalorder %s2863_s4, %s2166_s8  ;;  %s2306_s22 = smov [#allocation9]  }
 0xa94   : > { %s2170_s18 = sshll.u32 %s2306_s22, 4  ;;  %s2171_s18 = int_to_ptr.vmem [resolvable:$false] %s2170_s18 }
 0xa95   : > { %s2172_s13 = scalar_lea.vmem %s2171_s18, 512  ;;  %p2173_p9 = scmp.lt.s32.totalorder %s2863_s4, %s2171_s18 }
 0xa96   : > { %s1835_s23 = sshll.u32 %s3036_s0, 8  ;;  %p3039_p5 = scmp.ne.s32.totalorder %s3037_s29, 0 }
 0xa97   : > { %s2860_s28 = scalar_lea.hbm %s3038_s5, %s1835_s23  ;;  %p2174_p2 = scmp.lt.s32.totalorder %s2172_s13, %s2166_s8 }
 0xa98   : > { %p2168_p3 = pnand %p2167_p0, %p3039_p5 }
 0xa99   : > { %p2175_p11 = por %p2174_p2, %p2173_p9 }
 0xa9a   : > { %p2169_p1 = pneg %p2168_p3 }
 0xa9c   : > { %p2176_p7 = pnand %p2175_p11, %p2169_p1 }
 0xa9e   : > { %2179 = shalt.err (!%p2176_p7)
}
 0xa9f   : > { %s2180_s16 = scalar_lea.hbm %s2860_s28, 256  ;;  %s2184_s12 = scalar_lea.hbm %s3038_s5, 512 }
 0xaa0   : > { %p2181_p4 = scmp.ne.s32.totalorder %s2860_s28, %s2180_s16  ;;  %p2185_p6 = scmp.lt.u32.totalorder %s2860_s28, %s3038_s5 }
 0xaa1   : > { %p2186_p13 = scmp.lt.u32.totalorder %s2184_s12, %s2180_s16  ;;  %p2188_p0 = scmp.lt.u32.totalorder %s2180_s16, %s2860_s28 }
 0xaa2   : > { %p2182_p8 = pnand %p2181_p4, %p3039_p5 }
 0xaa3   : > { %p2187_p12 = por %p2186_p13, %p2185_p6 }
 0xaa4   : > { %p2183_p10 = pneg %p2182_p8 }
 0xaa5   : > { %p2189_p3 = por %p2188_p0, %p2187_p12 }
 0xaa7   : > { %p2190_p1 = pnand %p2189_p3, %p2183_p10 }
 0xaa9   : > { %2193 = shalt.err (!%p2190_p1)
}
 0xaaa   : > { %s2307_s3 = smov 128   ;;  %s2308_s20 = smov 8  }
 0xaab   : > { %1935 = dma.vmem_to_hbm [thread:$0]  (%p3039_p5), %s2863_s4, 256, %s2860_s28, %s1523_s19, %s2307_s3, %s2307_s3, %s2308_s20  }
 0xaac PF: > { %s3040_s7 = sld [smem:[#allocation21_spill]]  ;;  %s3041_s21 = sld [smem:[#allocation15_spill]] }
 0xaad   : > { %s3042_s27 = sld [smem:[#allocation23_spill]] }
 0xab2   : > { %p1949_p9 = scmp.ge.s32.totalorder %s3040_s7, 2  ;;  %s1551_s9 = sand.u32 1, %s3041_s21  }
 0xab3   : > { %p3043_p2 = scmp.ne.s32.totalorder %s3042_s27, 0  ;;  %s1552_s11 = scalar_lea.sflag [#allocation6], %s1551_s9 }
 0xab5   : > { %p1945_p11 = pnand %p1949_p9, %p3043_p2 }
 0xab7   : > { %2247 = dma.done.wait (!%p1945_p11), %s1552_s11, 256  }
 0xab8   : > { %2249 = vsyncadd (!%p1945_p11), %s1552_s11, 4294967040  ;;  %s33_s23 = sadd.s32 1, %s3040_s7   ;;  %s3044_s29 = sld [smem:[#allocation13_spill]] }
 0xab9   : > { %p30_p7 = scmp.ge.s32.totalorder %s33_s23, 6   ;;  %s3045_s30 = sld [smem:[#allocation14_spill]] }
 0xaba   : > { %s3046_s15 = sld [smem:[#allocation26_spill]]  ;;  %s3047_s16 = sld [smem:[#allocation16_spill]] }
 0xabb   : > { %s3048_s17 = sld [smem:[#allocation17_spill]]  ;;  %s3049_s18 = sld [smem:[#allocation27_spill]] }
 0xabc   : > { %s3050_s19 = sld [smem:[#allocation19_spill]]  ;;  %s3051_s20 = sld [smem:[#allocation20_spill]] }
 0xabd   : > { %s3052_s21 = sld [smem:[#allocation24_spill]]  ;;  %s3053_s22 = sld [smem:[#allocation25_spill]] }
 0xabe   :  { %32 = sbr.rel (!%p30_p7) target bundleno = 26 (0x1a), region = 178 }
 0xac5   :  { %1557 = vsyncpa [#allocation5], 1 }
 0xac6   :  { %1559 = vsyncpa [#allocation5 + $0x1], 1 }
 0xac7   :  { %1560 = vsyncpa [#allocation8], 1 }
 0xac8   :  { %1562 = vsyncpa [#allocation8 + $0x1], 1 }
 0xac9   :  { %1563 = vsyncpa [#allocation6], 1 }
 0xaca   :  { %1565 = vsyncpa [#allocation6 + $0x1], 1 }

</bundles_post_ra>
